<compile_context>
chip_gen: v5e
topology: v5e:2x2
jax: 0.10.0
libtpu: 0.0.40
codegen_flags: <defaults>
</compile_context>

<pallas_src>
import math
import jax
import jax.numpy as jnp
from jax.experimental import pallas as pl
from jax.experimental.pallas import tpu as pltpu

# ----- synthetic LayoutLMv3-style config (small) -----
BATCH = 2
SEQ = 16
HIDDEN = 32
NUM_HEADS = 4
HEAD_DIM = HIDDEN // NUM_HEADS
INTERMEDIATE = 64
NUM_LAYERS = 2
REL_POS_BINS = 32
MAX_REL_POS = 128
REL_2D_POS_BINS = 64
MAX_REL_2D_POS = 256
LN_EPS = 1e-5
COGVIEW_ALPHA = 32.0   # folded out of the kernel softmax (exact algebraic identity)
# dropout probs are irrelevant in eval mode (nn.Dropout is a no-op)


def _layer_norm(x, g, b):
    mu = jnp.mean(x, axis=-1, keepdims=True)
    var = jnp.mean((x - mu) ** 2, axis=-1, keepdims=True)
    return (x - mu) * jax.lax.rsqrt(var + LN_EPS) * g + b


def _gelu(x):
    # TODO(synk): HF "gelu" is the exact erf-based GELU; tanh approximation is used
    # since erf lowering on Mosaic is not guaranteed.
    return jax.nn.gelu(x, approximate=True)


# ------------------------- Pallas kernel: the whole encoder stack -------------------------
def encoder_stack_kernel(x_ref, bias_ref,
                         wqkv_ref, bqkv_ref, wo_ref, bo_ref, g1_ref, b1_ref,
                         wi_ref, bi_ref, wo2_ref, bo2_ref, g2_ref, b2_ref,
                         out_ref):
    B, S, D, H, dh = BATCH, SEQ, HIDDEN, NUM_HEADS, HEAD_DIM

    # Layer 0: seed the resident residual stream. out_ref stays in VMEM across the
    # whole "arbitrary" layer grid (its block index never changes), so hidden_states
    # never touch HBM between layers.
    @pl.when(pl.program_id(0) == 0)
    def _():
        out_ref[...] = x_ref[...]

    x = out_ref[...]                                       # (B*S, D) f32 residual
    xb = x.astype(jnp.bfloat16)

    # ---- fused QKV projection: one (B*S, D) @ (D, 3D) MXU pass (bf16 in, f32 acc) ----
    qkv = jnp.dot(xb, wqkv_ref[0],
                  preferred_element_type=jnp.float32) + bqkv_ref[0]    # (B*S, 3D) f32

    # ---- move heads to a leading batch dim: (B*H, S, dh) ----
    # One-shot layout staging (static slices + leading-axis concat); all the matmuls
    # and the softmax below are fully (batch*head)-batched — no per-head matmul loop.
    inv_sqrt_dh = 1.0 / math.sqrt(dh)
    q_parts, k_parts, v_parts = [], [], []
    for b in range(B):
        r0 = b * S
        for h in range(H):
            c0 = h * dh
            q_parts.append(qkv[r0:r0 + S, c0:c0 + dh].reshape(1, S, dh))
            k_parts.append(qkv[r0:r0 + S, D + c0:D + c0 + dh].reshape(1, S, dh))
            v_parts.append(qkv[r0:r0 + S, 2 * D + c0:2 * D + c0 + dh].reshape(1, S, dh))
    q = jnp.concatenate(q_parts, axis=0) * inv_sqrt_dh      # (B*H, S, dh) f32
    k = jnp.concatenate(k_parts, axis=0)
    v = jnp.concatenate(v_parts, axis=0)

    # ---- attention scores for every (batch, head) pair in one batched MXU einsum ----
    scores = jnp.einsum('nqd,nkd->nqk',
                        q.astype(jnp.bfloat16), k.astype(jnp.bfloat16),
                        preferred_element_type=jnp.float32)             # (B*H, S, S)
    scores = scores + bias_ref[...].astype(jnp.float32)     # (rel1d+rel2d)/sqrt(dh) + mask

    # cogview PB-Relax softmax == numerically-stable softmax (exact fold; no /alpha pass)
    m = jnp.max(scores, axis=-1, keepdims=True)
    e = jnp.exp(scores - m)
    probs = e * pl.reciprocal(jnp.sum(e, axis=-1, keepdims=True), approx=True)

    ctx = jnp.einsum('nqk,nkd->nqd',
                     probs.astype(jnp.bfloat16), v.astype(jnp.bfloat16),
                     preferred_element_type=jnp.float32)                 # (B*H, S, dh)

    # ---- heads back to lanes: one full-width (B*S, D) value, no masked scratch stores ----
    ctx2 = jnp.concatenate(
        [jnp.concatenate([ctx[b * H + h] for h in range(H)], axis=-1)    # (S, D)
         for b in range(B)], axis=0)                                     # (B*S, D)

    # ---- RobertaSelfOutput: dense + residual + LayerNorm ----
    attn = jnp.dot(ctx2.astype(jnp.bfloat16), wo_ref[0],
                   preferred_element_type=jnp.float32) + bo_ref[0]
    a = _layer_norm(attn + x, g1_ref[0], b1_ref[0])

    # ---- RobertaIntermediate (gelu) + RobertaOutput: dense + residual + LayerNorm ----
    inter = _gelu(jnp.dot(a.astype(jnp.bfloat16), wi_ref[0],
                          preferred_element_type=jnp.float32) + bi_ref[0])
    ffn = jnp.dot(inter.astype(jnp.bfloat16), wo2_ref[0],
                  preferred_element_type=jnp.float32) + bo2_ref[0]
    out_ref[...] = _layer_norm(ffn + a, g2_ref[0], b2_ref[0])


def run_encoder_stack(x2d, bias, stacked):
    BS, D = x2d.shape
    N, S, _ = bias.shape
    L = stacked['wqkv'].shape[0]
    ID = stacked['wi'].shape[2]

    def resident(*dims):
        z = (0,) * len(dims)
        return pl.BlockSpec(dims, lambda l, _z=z: _z)        # same block every layer -> DMA'd once

    def per_layer(*dims):
        z = (0,) * len(dims)
        return pl.BlockSpec((1,) + dims, lambda l, _z=z: (l,) + _z)

    in_specs = [
        resident(BS, D),                                     # hidden states (layer-0 seed)
        resident(N, S, S),                                   # additive attention bias (bf16)
        per_layer(D, 3 * D), per_layer(1, 3 * D),            # wqkv, bqkv
        per_layer(D, D), per_layer(1, D),                    # wo, bo
        per_layer(1, D), per_layer(1, D),                    # ln1 gamma, beta
        per_layer(D, ID), per_layer(1, ID),                  # wi, bi
        per_layer(ID, D), per_layer(1, D),                   # wo2, bo2
        per_layer(1, D), per_layer(1, D),                    # ln2 gamma, beta
    ]
    out_spec = pl.BlockSpec((BS, D), lambda l: (0, 0))       # resident accumulator across layers

    return pl.pallas_call(
        encoder_stack_kernel,
        out_shape=jax.ShapeDtypeStruct((BS, D), jnp.float32),
        grid_spec=pltpu.PrefetchScalarGridSpec(
            num_scalar_prefetch=0,
            grid=(L,),
            in_specs=in_specs,
            out_specs=out_spec),
        compiler_params=pltpu.CompilerParams(
            dimension_semantics=("arbitrary",),              # layer axis carries the residual
            vmem_limit_bytes=64 * 1024 * 1024),
    )(x2d, bias,
      stacked['wqkv'], stacked['bqkv'], stacked['wo'], stacked['bo'],
      stacked['g1'], stacked['b1'], stacked['wi'], stacked['bi'],
      stacked['wo2'], stacked['bo2'], stacked['g2'], stacked['b2'])


# ------------------------- relative position bias (plain-JAX integer glue) -------------------------
def relative_position_bucket(rel_pos, num_buckets, max_distance):
    # bidirectional=True branch of LayoutLMv3Encoder.relative_position_bucket
    half = num_buckets // 2
    ret = (rel_pos > 0).astype(jnp.int32) * half
    n = jnp.abs(rel_pos)
    max_exact = half // 2
    is_small = n < max_exact
    n_f = jnp.maximum(n, 1).astype(jnp.float32)              # avoid log(0) in unselected branch
    val_if_large = max_exact + (
        jnp.log(n_f / max_exact) / math.log(max_distance / max_exact)
        * (half - max_exact)).astype(jnp.int32)
    val_if_large = jnp.minimum(val_if_large, half - 1)
    return ret + jnp.where(is_small, n, val_if_large)


def cal_1d_pos_emb(position_ids, rel_pos_table):
    rel_pos_mat = position_ids[:, None, :] - position_ids[:, :, None]
    buckets = relative_position_bucket(rel_pos_mat, REL_POS_BINS, MAX_REL_POS)
    rel_pos = rel_pos_table[buckets]                          # one_hot @ W.T == table lookup
    return jnp.transpose(rel_pos, (0, 3, 1, 2))               # (B, H, S, S)


def cal_2d_pos_emb(bbox, rel_x_table, rel_y_table):
    pos_x = bbox[:, :, 0]
    pos_y = bbox[:, :, 3]
    rel_x_mat = pos_x[:, None, :] - pos_x[:, :, None]
    rel_y_mat = pos_y[:, None, :] - pos_y[:, :, None]
    bx = relative_position_bucket(rel_x_mat, REL_2D_POS_BINS, MAX_REL_2D_POS)
    by = relative_position_bucket(rel_y_mat, REL_2D_POS_BINS, MAX_REL_2D_POS)
    rel_x = jnp.transpose(rel_x_table[bx], (0, 3, 1, 2))
    rel_y = jnp.transpose(rel_y_table[by], (0, 3, 1, 2))
    return rel_x + rel_y                                      # (B, H, S, S)


def compute_attention_bias(bbox, attention_mask, position_ids,
                           rel_pos_table, rel_x_table, rel_y_table):
    rel_pos = cal_1d_pos_emb(position_ids, rel_pos_table)
    rel_2d_pos = cal_2d_pos_emb(bbox, rel_x_table, rel_y_table)
    ext_mask = (1.0 - attention_mask)[:, None, None, :] * -10000.0
    bias = (rel_pos + rel_2d_pos) / math.sqrt(HEAD_DIM) + ext_mask
    return bias.astype(jnp.bfloat16)                          # bf16: halves HBM for largest operand


# ------------------------- encoder forward -------------------------
def stack_layer_params(layer_params):
    bf16 = jnp.bfloat16
    return dict(
        wqkv=jnp.stack([jnp.concatenate([p['wq'], p['wk'], p['wv']], axis=1)
                        for p in layer_params]).astype(bf16),
        bqkv=jnp.stack([jnp.concatenate([p['bq'], p['bk'], p['bv']], axis=1)
                        for p in layer_params]),
        wo=jnp.stack([p['wo'] for p in layer_params]).astype(bf16),
        bo=jnp.stack([p['bo'] for p in layer_params]),
        g1=jnp.stack([p['g1'] for p in layer_params]),
        b1=jnp.stack([p['b1'] for p in layer_params]),
        wi=jnp.stack([p['wi'] for p in layer_params]).astype(bf16),
        bi=jnp.stack([p['bi'] for p in layer_params]),
        wo2=jnp.stack([p['wo2'] for p in layer_params]).astype(bf16),
        bo2=jnp.stack([p['bo2'] for p in layer_params]),
        g2=jnp.stack([p['g2'] for p in layer_params]),
        b2=jnp.stack([p['b2'] for p in layer_params]),
    )


def encoder_forward(hidden_states, bbox, attention_mask, position_ids,
                    stacked, rel_pos_table, rel_x_table, rel_y_table):
    B, S, D = hidden_states.shape
    bias = compute_attention_bias(bbox, attention_mask, position_ids,
                                  rel_pos_table, rel_x_table, rel_y_table)
    bias = bias.reshape(B * NUM_HEADS, S, S)                  # flatten (b,h) batch dims
    x2d = hidden_states.reshape(B * S, D).astype(jnp.float32)
    out2d = run_encoder_stack(x2d, bias, stacked)
    return out2d.reshape(B, S, D)
    # TODO(synk): detection FPN branch (ConvTranspose2d/BatchNorm/MaxPool) and the
    # customized_encoder/customized_selfattn branches are not executed in the default
    # forward and are not implemented; gradient checkpointing is a training-only no-op.


# ------------------------- pure-JAX reference (for checking) -------------------------
def layer_ref(x, bias, p):
    B, S, D = x.shape
    bf16 = jnp.bfloat16

    def dense(t, w, b):
        return jnp.einsum('bsd,df->bsf', t.astype(bf16), w.astype(bf16),
                          preferred_element_type=jnp.float32) + b[0]

    q = dense(x, p['wq'], p['bq'])
    k = dense(x, p['wk'], p['bk'])
    v = dense(x, p['wv'], p['bv'])

    def split(t):
        return t.reshape(B, S, NUM_HEADS, HEAD_DIM).transpose(0, 2, 1, 3)

    qh = split(q) * (1.0 / math.sqrt(HEAD_DIM))
    kh, vh = split(k), split(v)
    scores = jnp.einsum('bhqd,bhkd->bhqk', qh.astype(bf16), kh.astype(bf16),
                        preferred_element_type=jnp.float32) + bias
    # literal HF cogview_attn (PB-Relax)
    scaled = scores / COGVIEW_ALPHA
    m = jnp.max(scaled, axis=-1, keepdims=True)
    probs = jax.nn.softmax((scaled - m) * COGVIEW_ALPHA, axis=-1)
    ctx = jnp.einsum('bhqk,bhkd->bhqd', probs.astype(bf16), vh.astype(bf16),
                     preferred_element_type=jnp.float32)
    ctx = ctx.transpose(0, 2, 1, 3).reshape(B, S, D)
    attn = dense(ctx, p['wo'], p['bo'])
    a = _layer_norm(attn + x, p['g1'][0], p['b1'][0])
    inter = _gelu(dense(a, p['wi'], p['bi']))
    ffn = dense(inter, p['wo2'], p['bo2'])
    return _layer_norm(ffn + a, p['g2'][0], p['b2'][0])


def encoder_forward_ref(hidden_states, bbox, attention_mask, position_ids,
                        layer_params, rel_pos_table, rel_x_table, rel_y_table):
    bias = compute_attention_bias(bbox, attention_mask, position_ids,
                                  rel_pos_table, rel_x_table, rel_y_table).astype(jnp.float32)
    x = hidden_states.astype(jnp.float32)
    for p in layer_params:
        x = layer_ref(x, bias, p)
    return x


# ------------------------- main -------------------------
if __name__ == "__main__":
    key = jax.random.PRNGKey(0)
    keys = list(jax.random.split(key, 64))
    _kit = iter(keys)

    def nrm(shape, scale=0.02):
        return (jax.random.normal(next(_kit), shape) * scale).astype(jnp.float32)

    layer_params = []
    for _ in range(NUM_LAYERS):
        layer_params.append(dict(
            wq=nrm((HIDDEN, HIDDEN)), bq=nrm((1, HIDDEN)),
            wk=nrm((HIDDEN, HIDDEN)), bk=nrm((1, HIDDEN)),
            wv=nrm((HIDDEN, HIDDEN)), bv=nrm((1, HIDDEN)),
            wo=nrm((HIDDEN, HIDDEN)), bo=nrm((1, HIDDEN)),
            g1=jnp.ones((1, HIDDEN), jnp.float32), b1=jnp.zeros((1, HIDDEN), jnp.float32),
            wi=nrm((HIDDEN, INTERMEDIATE)), bi=nrm((1, INTERMEDIATE)),
            wo2=nrm((INTERMEDIATE, HIDDEN)), bo2=nrm((1, HIDDEN)),
            g2=jnp.ones((1, HIDDEN), jnp.float32), b2=jnp.zeros((1, HIDDEN), jnp.float32),
        ))
    # rel_pos_bias / rel_pos_x_bias / rel_pos_y_bias: Linear(bins, H, bias=False),
    # stored here directly as (bins, H) lookup tables (== W.T).
    rel_pos_table = nrm((REL_POS_BINS, NUM_HEADS))
    rel_x_table = nrm((REL_2D_POS_BINS, NUM_HEADS))
    rel_y_table = nrm((REL_2D_POS_BINS, NUM_HEADS))

    hidden_states = jax.random.normal(next(_kit), (BATCH, SEQ, HIDDEN), dtype=jnp.float32)
    bbox = jax.random.randint(next(_kit), (BATCH, SEQ, 4), 0, 1000, dtype=jnp.int32)
    position_ids = jnp.broadcast_to(jnp.arange(SEQ, dtype=jnp.int32)[None, :], (BATCH, SEQ))
    attention_mask = jnp.ones((BATCH, SEQ), jnp.float32).at[1, SEQ - 3:].set(0.0)

    stacked = stack_layer_params(layer_params)

    out = encoder_forward(hidden_states, bbox, attention_mask, position_ids,
                          stacked, rel_pos_table, rel_x_table, rel_y_table)
    out = jax.block_until_ready(out)

    ref = encoder_forward_ref(hidden_states, bbox, attention_mask, position_ids,
                              layer_params, rel_pos_table, rel_x_table, rel_y_table)
    assert out.shape == (BATCH, SEQ, HIDDEN)
    max_err = float(jnp.max(jnp.abs(out - ref)))
    assert jnp.allclose(out, ref, atol=2e-2, rtol=2e-2), \
        f"Pallas output mismatch vs JAX reference (max abs err={max_err})"

    print("KERNEL_OK")
</pallas_src>

<mosaic_0001>
module attributes {stable_mosaic.version = 11 : i64} {
  func.func @encoder_stack_kernel(%arg0: i32, %arg1: memref<32x32xf32, #tpu.memory_space<vmem>>, %arg2: memref<8x16x16xbf16, #tpu.memory_space<vmem>>, %arg3: memref<1x32x96xbf16, #tpu.memory_space<vmem>>, %arg4: memref<1x1x96xf32, #tpu.memory_space<vmem>>, %arg5: memref<1x32x32xbf16, #tpu.memory_space<vmem>>, %arg6: memref<1x1x32xf32, #tpu.memory_space<vmem>>, %arg7: memref<1x1x32xf32, #tpu.memory_space<vmem>>, %arg8: memref<1x1x32xf32, #tpu.memory_space<vmem>>, %arg9: memref<1x32x64xbf16, #tpu.memory_space<vmem>>, %arg10: memref<1x1x64xf32, #tpu.memory_space<vmem>>, %arg11: memref<1x64x32xbf16, #tpu.memory_space<vmem>>, %arg12: memref<1x1x32xf32, #tpu.memory_space<vmem>>, %arg13: memref<1x1x32xf32, #tpu.memory_space<vmem>>, %arg14: memref<1x1x32xf32, #tpu.memory_space<vmem>>, %arg15: memref<32x32xf32, #tpu.memory_space<vmem>>) attributes {dimension_semantics = [#tpu.dimension_semantics<arbitrary>], iteration_bounds = array<i64: 2>, scalar_prefetch = 0 : i64, scratch_operands = 0 : i64, tpu.core_type = #tpu.core_type<tc>, window_params = [{pipeline_mode = #tpu.pipeline_mode<synchronous>, transform_indices = @transform_0, window_bounds = array<i64: 32, 32>}, {pipeline_mode = #tpu.pipeline_mode<synchronous>, transform_indices = @transform_1, window_bounds = array<i64: 8, 16, 16>}, {transform_indices = @transform_2, window_bounds = array<i64: 1, 32, 96>}, {transform_indices = @transform_3, window_bounds = array<i64: 1, 1, 96>}, {transform_indices = @transform_4, window_bounds = array<i64: 1, 32, 32>}, {transform_indices = @transform_5, window_bounds = array<i64: 1, 1, 32>}, {transform_indices = @transform_6, window_bounds = array<i64: 1, 1, 32>}, {transform_indices = @transform_7, window_bounds = array<i64: 1, 1, 32>}, {transform_indices = @transform_8, window_bounds = array<i64: 1, 32, 64>}, {transform_indices = @transform_9, window_bounds = array<i64: 1, 1, 64>}, {transform_indices = @transform_10, window_bounds = array<i64: 1, 64, 32>}, {transform_indices = @transform_11, window_bounds = array<i64: 1, 1, 32>}, {transform_indices = @transform_12, window_bounds = array<i64: 1, 1, 32>}, {transform_indices = @transform_13, window_bounds = array<i64: 1, 1, 32>}, {pipeline_mode = #tpu.pipeline_mode<synchronous>, transform_indices = @transform_14, window_bounds = array<i64: 32, 32>}]} {
    %c0_i32 = arith.constant 0 : i32
    %0 = arith.cmpi eq, %arg0, %c0_i32 : i32
    %1 = arith.extui %0 : i1 to i32
    %c0_i32_0 = arith.constant 0 : i32
    %2 = arith.cmpi ne, %1, %c0_i32_0 : i32
    scf.if %2 {
      %c0_65 = arith.constant 0 : index
      %c0_66 = arith.constant 0 : index
      %195 = vector.load %arg1[%c0_65, %c0_66] : memref<32x32xf32, #tpu.memory_space<vmem>>, vector<32x32xf32>
      %c0_67 = arith.constant 0 : index
      %c0_68 = arith.constant 0 : index
      %196 = vector.load %arg15[%c0_67, %c0_68] : memref<32x32xf32, #tpu.memory_space<vmem>>, vector<32x32xf32>
      tpu.vector_store %arg15[%c0_67, %c0_68], %195 {strides = array<i32>} : memref<32x32xf32, #tpu.memory_space<vmem>>, vector<32x32xf32>,
    } else {
    }
    %c0 = arith.constant 0 : index
    %c0_1 = arith.constant 0 : index
    %3 = vector.load %arg15[%c0, %c0_1] : memref<32x32xf32, #tpu.memory_space<vmem>>, vector<32x32xf32>
    %4 = arith.truncf %3 : vector<32x32xf32> to vector<32x32xbf16>
    %c0_2 = arith.constant 0 : index
    %c0_3 = arith.constant 0 : index
    %c0_4 = arith.constant 0 : index
    %5 = vector.load %arg3[%c0_2, %c0_3, %c0_4] : memref<1x32x96xbf16, #tpu.memory_space<vmem>>, vector<1x32x96xbf16>
    %6 = vector.shape_cast %5 : vector<1x32x96xbf16> to vector<32x96xbf16>
    %cst = arith.constant dense<0.000000e+00> : vector<32x96xf32>
    %7 = tpu.matmul %4, %6, %cst {dimension_numbers = #tpu.dot_dimension_numbers<[1], [0], [0], [1], [0, 0, 1, 1], [], []>} : vector<32x32xbf16>, vector<32x96xbf16>, vector<32x96xf32> -> vector<32x96xf32>
    %c0_5 = arith.constant 0 : index
    %c0_6 = arith.constant 0 : index
    %c0_7 = arith.constant 0 : index
    %8 = vector.load %arg4[%c0_5, %c0_6, %c0_7] : memref<1x1x96xf32, #tpu.memory_space<vmem>>, vector<1x1x96xf32>
    %9 = vector.shape_cast %8 : vector<1x1x96xf32> to vector<1x96xf32>
    %10 = vector.broadcast %9 : vector<1x96xf32> to vector<32x96xf32>
    %11 = arith.addf %7, %10 : vector<32x96xf32>
    %12 = vector.extract_strided_slice %11 {offsets = [0, 0], sizes = [16, 8], strides = [1, 1]} : vector<32x96xf32> to vector<16x8xf32>
    %13 = vector.shape_cast %12 : vector<16x8xf32> to vector<1x16x8xf32>
    %14 = vector.extract_strided_slice %11 {offsets = [0, 32], sizes = [16, 8], strides = [1, 1]} : vector<32x96xf32> to vector<16x8xf32>
    %15 = vector.shape_cast %14 : vector<16x8xf32> to vector<1x16x8xf32>
    %16 = vector.extract_strided_slice %11 {offsets = [0, 64], sizes = [16, 8], strides = [1, 1]} : vector<32x96xf32> to vector<16x8xf32>
    %17 = vector.shape_cast %16 : vector<16x8xf32> to vector<1x16x8xf32>
    %18 = vector.extract_strided_slice %11 {offsets = [0, 8], sizes = [16, 8], strides = [1, 1]} : vector<32x96xf32> to vector<16x8xf32>
    %19 = vector.shape_cast %18 : vector<16x8xf32> to vector<1x16x8xf32>
    %20 = vector.extract_strided_slice %11 {offsets = [0, 40], sizes = [16, 8], strides = [1, 1]} : vector<32x96xf32> to vector<16x8xf32>
    %21 = vector.shape_cast %20 : vector<16x8xf32> to vector<1x16x8xf32>
    %22 = vector.extract_strided_slice %11 {offsets = [0, 72], sizes = [16, 8], strides = [1, 1]} : vector<32x96xf32> to vector<16x8xf32>
    %23 = vector.shape_cast %22 : vector<16x8xf32> to vector<1x16x8xf32>
    %24 = vector.extract_strided_slice %11 {offsets = [0, 16], sizes = [16, 8], strides = [1, 1]} : vector<32x96xf32> to vector<16x8xf32>
    %25 = vector.shape_cast %24 : vector<16x8xf32> to vector<1x16x8xf32>
    %26 = vector.extract_strided_slice %11 {offsets = [0, 48], sizes = [16, 8], strides = [1, 1]} : vector<32x96xf32> to vector<16x8xf32>
    %27 = vector.shape_cast %26 : vector<16x8xf32> to vector<1x16x8xf32>
    %28 = vector.extract_strided_slice %11 {offsets = [0, 80], sizes = [16, 8], strides = [1, 1]} : vector<32x96xf32> to vector<16x8xf32>
    %29 = vector.shape_cast %28 : vector<16x8xf32> to vector<1x16x8xf32>
    %30 = vector.extract_strided_slice %11 {offsets = [0, 24], sizes = [16, 8], strides = [1, 1]} : vector<32x96xf32> to vector<16x8xf32>
    %31 = vector.shape_cast %30 : vector<16x8xf32> to vector<1x16x8xf32>
    %32 = vector.extract_strided_slice %11 {offsets = [0, 56], sizes = [16, 8], strides = [1, 1]} : vector<32x96xf32> to vector<16x8xf32>
    %33 = vector.shape_cast %32 : vector<16x8xf32> to vector<1x16x8xf32>
    %34 = vector.extract_strided_slice %11 {offsets = [0, 88], sizes = [16, 8], strides = [1, 1]} : vector<32x96xf32> to vector<16x8xf32>
    %35 = vector.shape_cast %34 : vector<16x8xf32> to vector<1x16x8xf32>
    %36 = vector.extract_strided_slice %11 {offsets = [16, 0], sizes = [16, 8], strides = [1, 1]} : vector<32x96xf32> to vector<16x8xf32>
    %37 = vector.shape_cast %36 : vector<16x8xf32> to vector<1x16x8xf32>
    %38 = vector.extract_strided_slice %11 {offsets = [16, 32], sizes = [16, 8], strides = [1, 1]} : vector<32x96xf32> to vector<16x8xf32>
    %39 = vector.shape_cast %38 : vector<16x8xf32> to vector<1x16x8xf32>
    %40 = vector.extract_strided_slice %11 {offsets = [16, 64], sizes = [16, 8], strides = [1, 1]} : vector<32x96xf32> to vector<16x8xf32>
    %41 = vector.shape_cast %40 : vector<16x8xf32> to vector<1x16x8xf32>
    %42 = vector.extract_strided_slice %11 {offsets = [16, 8], sizes = [16, 8], strides = [1, 1]} : vector<32x96xf32> to vector<16x8xf32>
    %43 = vector.shape_cast %42 : vector<16x8xf32> to vector<1x16x8xf32>
    %44 = vector.extract_strided_slice %11 {offsets = [16, 40], sizes = [16, 8], strides = [1, 1]} : vector<32x96xf32> to vector<16x8xf32>
    %45 = vector.shape_cast %44 : vector<16x8xf32> to vector<1x16x8xf32>
    %46 = vector.extract_strided_slice %11 {offsets = [16, 72], sizes = [16, 8], strides = [1, 1]} : vector<32x96xf32> to vector<16x8xf32>
    %47 = vector.shape_cast %46 : vector<16x8xf32> to vector<1x16x8xf32>
    %48 = vector.extract_strided_slice %11 {offsets = [16, 16], sizes = [16, 8], strides = [1, 1]} : vector<32x96xf32> to vector<16x8xf32>
    %49 = vector.shape_cast %48 : vector<16x8xf32> to vector<1x16x8xf32>
    %50 = vector.extract_strided_slice %11 {offsets = [16, 48], sizes = [16, 8], strides = [1, 1]} : vector<32x96xf32> to vector<16x8xf32>
    %51 = vector.shape_cast %50 : vector<16x8xf32> to vector<1x16x8xf32>
    %52 = vector.extract_strided_slice %11 {offsets = [16, 80], sizes = [16, 8], strides = [1, 1]} : vector<32x96xf32> to vector<16x8xf32>
    %53 = vector.shape_cast %52 : vector<16x8xf32> to vector<1x16x8xf32>
    %54 = vector.extract_strided_slice %11 {offsets = [16, 24], sizes = [16, 8], strides = [1, 1]} : vector<32x96xf32> to vector<16x8xf32>
    %55 = vector.shape_cast %54 : vector<16x8xf32> to vector<1x16x8xf32>
    %56 = vector.extract_strided_slice %11 {offsets = [16, 56], sizes = [16, 8], strides = [1, 1]} : vector<32x96xf32> to vector<16x8xf32>
    %57 = vector.shape_cast %56 : vector<16x8xf32> to vector<1x16x8xf32>
    %58 = vector.extract_strided_slice %11 {offsets = [16, 88], sizes = [16, 8], strides = [1, 1]} : vector<32x96xf32> to vector<16x8xf32>
    %59 = vector.shape_cast %58 : vector<16x8xf32> to vector<1x16x8xf32>
    %60 = tpu.concatenate %13, %19, %25, %31, %37, %43, %49, %55 in 0 : vector<1x16x8xf32>, vector<1x16x8xf32>, vector<1x16x8xf32>, vector<1x16x8xf32>, vector<1x16x8xf32>, vector<1x16x8xf32>, vector<1x16x8xf32>, vector<1x16x8xf32> -> vector<8x16x8xf32>
    %cst_8 = arith.constant 0.353553385 : f32
    %61 = vector.broadcast %cst_8 : f32 to vector<8x16x8xf32>
    %62 = arith.mulf %60, %61 : vector<8x16x8xf32>
    %63 = tpu.concatenate %15, %21, %27, %33, %39, %45, %51, %57 in 0 : vector<1x16x8xf32>, vector<1x16x8xf32>, vector<1x16x8xf32>, vector<1x16x8xf32>, vector<1x16x8xf32>, vector<1x16x8xf32>, vector<1x16x8xf32>, vector<1x16x8xf32> -> vector<8x16x8xf32>
    %64 = tpu.concatenate %17, %23, %29, %35, %41, %47, %53, %59 in 0 : vector<1x16x8xf32>, vector<1x16x8xf32>, vector<1x16x8xf32>, vector<1x16x8xf32>, vector<1x16x8xf32>, vector<1x16x8xf32>, vector<1x16x8xf32>, vector<1x16x8xf32> -> vector<8x16x8xf32>
    %65 = arith.truncf %62 : vector<8x16x8xf32> to vector<8x16x8xbf16>
    %66 = arith.truncf %63 : vector<8x16x8xf32> to vector<8x16x8xbf16>
    "tpu.trace_start"() <{level = 10 : i32, message = "nqd,nkd->nqk"}> : () -> ()
    %cst_9 = arith.constant dense<0.000000e+00> : vector<8x16x16xf32>
    %67 = tpu.matmul %65, %66, %cst_9 {dimension_numbers = #tpu.dot_dimension_numbers<[2], [2], [1], [1], [0, 0, 0, 1, 1, 1], [0], [0]>} : vector<8x16x8xbf16>, vector<8x16x8xbf16>, vector<8x16x16xf32> -> vector<8x16x16xf32>
    "tpu.trace_stop"() : () -> ()
    %c0_10 = arith.constant 0 : index
    %c0_11 = arith.constant 0 : index
    %c0_12 = arith.constant 0 : index
    %68 = vector.load %arg2[%c0_10, %c0_11, %c0_12] : memref<8x16x16xbf16, #tpu.memory_space<vmem>>, vector<8x16x16xbf16>
    %69 = arith.extf %68 : vector<8x16x16xbf16> to vector<8x16x16xf32>
    %70 = arith.addf %67, %69 : vector<8x16x16xf32>
    %cst_13 = arith.constant dense<0xFF800000> : vector<8x16xf32>
    %71 = vector.multi_reduction <maximumf>, %70, %cst_13 [2] : vector<8x16x16xf32> to vector<8x16xf32>
    %72 = vector.shape_cast %71 : vector<8x16xf32> to vector<8x16x1xf32>
    %73 = vector.broadcast %72 : vector<8x16x1xf32> to vector<8x16x16xf32>
    %74 = arith.subf %70, %73 : vector<8x16x16xf32>
    %75 = math.exp %74 : vector<8x16x16xf32>
    %cst_14 = arith.constant dense<0.000000e+00> : vector<8x16xf32>
    %76 = vector.multi_reduction <add>, %75, %cst_14 [2] : vector<8x16x16xf32> to vector<8x16xf32>
    %77 = vector.shape_cast %76 : vector<8x16xf32> to vector<8x16x1xf32>
    %78 = tpu.reciprocal %77 {approx = true} : vector<8x16x1xf32> -> vector<8x16x1xf32>
    %79 = vector.broadcast %78 : vector<8x16x1xf32> to vector<8x16x16xf32>
    %80 = arith.mulf %75, %79 : vector<8x16x16xf32>
    %81 = arith.truncf %80 : vector<8x16x16xf32> to vector<8x16x16xbf16>
    %82 = arith.truncf %64 : vector<8x16x8xf32> to vector<8x16x8xbf16>
    "tpu.trace_start"() <{level = 10 : i32, message = "nqk,nkd->nqd"}> : () -> ()
    %cst_15 = arith.constant dense<0.000000e+00> : vector<8x16x8xf32>
    %83 = tpu.matmul %81, %82, %cst_15 {dimension_numbers = #tpu.dot_dimension_numbers<[2], [1], [1], [2], [0, 0, 0, 1, 1, 2], [0], [0]>} : vector<8x16x16xbf16>, vector<8x16x8xbf16>, vector<8x16x8xf32> -> vector<8x16x8xf32>
    "tpu.trace_stop"() : () -> ()
    %84 = vector.extract_strided_slice %83 {offsets = [0, 0, 0], sizes = [1, 16, 8], strides = [1, 1, 1]} : vector<8x16x8xf32> to vector<1x16x8xf32>
    %85 = vector.shape_cast %84 : vector<1x16x8xf32> to vector<16x8xf32>
    %86 = vector.extract_strided_slice %83 {offsets = [1, 0, 0], sizes = [1, 16, 8], strides = [1, 1, 1]} : vector<8x16x8xf32> to vector<1x16x8xf32>
    %87 = vector.shape_cast %86 : vector<1x16x8xf32> to vector<16x8xf32>
    %88 = vector.extract_strided_slice %83 {offsets = [2, 0, 0], sizes = [1, 16, 8], strides = [1, 1, 1]} : vector<8x16x8xf32> to vector<1x16x8xf32>
    %89 = vector.shape_cast %88 : vector<1x16x8xf32> to vector<16x8xf32>
    %90 = vector.extract_strided_slice %83 {offsets = [3, 0, 0], sizes = [1, 16, 8], strides = [1, 1, 1]} : vector<8x16x8xf32> to vector<1x16x8xf32>
    %91 = vector.shape_cast %90 : vector<1x16x8xf32> to vector<16x8xf32>
    %92 = tpu.concatenate %85, %87, %89, %91 in 1 : vector<16x8xf32>, vector<16x8xf32>, vector<16x8xf32>, vector<16x8xf32> -> vector<16x32xf32>
    %93 = vector.extract_strided_slice %83 {offsets = [4, 0, 0], sizes = [1, 16, 8], strides = [1, 1, 1]} : vector<8x16x8xf32> to vector<1x16x8xf32>
    %94 = vector.shape_cast %93 : vector<1x16x8xf32> to vector<16x8xf32>
    %95 = vector.extract_strided_slice %83 {offsets = [5, 0, 0], sizes = [1, 16, 8], strides = [1, 1, 1]} : vector<8x16x8xf32> to vector<1x16x8xf32>
    %96 = vector.shape_cast %95 : vector<1x16x8xf32> to vector<16x8xf32>
    %97 = vector.extract_strided_slice %83 {offsets = [6, 0, 0], sizes = [1, 16, 8], strides = [1, 1, 1]} : vector<8x16x8xf32> to vector<1x16x8xf32>
    %98 = vector.shape_cast %97 : vector<1x16x8xf32> to vector<16x8xf32>
    %99 = vector.extract_strided_slice %83 {offsets = [7, 0, 0], sizes = [1, 16, 8], strides = [1, 1, 1]} : vector<8x16x8xf32> to vector<1x16x8xf32>
    %100 = vector.shape_cast %99 : vector<1x16x8xf32> to vector<16x8xf32>
    %101 = tpu.concatenate %94, %96, %98, %100 in 1 : vector<16x8xf32>, vector<16x8xf32>, vector<16x8xf32>, vector<16x8xf32> -> vector<16x32xf32>
    %102 = tpu.concatenate %92, %101 in 0 : vector<16x32xf32>, vector<16x32xf32> -> vector<32x32xf32>
    %103 = arith.truncf %102 : vector<32x32xf32> to vector<32x32xbf16>
    %c0_16 = arith.constant 0 : index
    %c0_17 = arith.constant 0 : index
    %c0_18 = arith.constant 0 : index
    %104 = vector.load %arg5[%c0_16, %c0_17, %c0_18] : memref<1x32x32xbf16, #tpu.memory_space<vmem>>, vector<1x32x32xbf16>
    %105 = vector.shape_cast %104 : vector<1x32x32xbf16> to vector<32x32xbf16>
    %cst_19 = arith.constant dense<0.000000e+00> : vector<32x32xf32>
    %106 = tpu.matmul %103, %105, %cst_19 {dimension_numbers = #tpu.dot_dimension_numbers<[1], [0], [0], [1], [0, 0, 1, 1], [], []>} : vector<32x32xbf16>, vector<32x32xbf16>, vector<32x32xf32> -> vector<32x32xf32>
    %c0_20 = arith.constant 0 : index
    %c0_21 = arith.constant 0 : index
    %c0_22 = arith.constant 0 : index
    %107 = vector.load %arg6[%c0_20, %c0_21, %c0_22] : memref<1x1x32xf32, #tpu.memory_space<vmem>>, vector<1x1x32xf32>
    %108 = vector.shape_cast %107 : vector<1x1x32xf32> to vector<1x32xf32>
    %109 = vector.broadcast %108 : vector<1x32xf32> to vector<32x32xf32>
    %110 = arith.addf %106, %109 : vector<32x32xf32>
    %111 = arith.addf %110, %3 : vector<32x32xf32>
    %c0_23 = arith.constant 0 : index
    %c0_24 = arith.constant 0 : index
    %c0_25 = arith.constant 0 : index
    %112 = vector.load %arg7[%c0_23, %c0_24, %c0_25] : memref<1x1x32xf32, #tpu.memory_space<vmem>>, vector<1x1x32xf32>
    %113 = vector.shape_cast %112 : vector<1x1x32xf32> to vector<1x32xf32>
    %c0_26 = arith.constant 0 : index
    %c0_27 = arith.constant 0 : index
    %c0_28 = arith.constant 0 : index
    %114 = vector.load %arg8[%c0_26, %c0_27, %c0_28] : memref<1x1x32xf32, #tpu.memory_space<vmem>>, vector<1x1x32xf32>
    %115 = vector.shape_cast %114 : vector<1x1x32xf32> to vector<1x32xf32>
    %cst_29 = arith.constant dense<0.000000e+00> : vector<32xf32>
    %116 = vector.multi_reduction <add>, %111, %cst_29 [1] : vector<32x32xf32> to vector<32xf32>
    %117 = vector.shape_cast %116 : vector<32xf32> to vector<32x1xf32>
    %cst_30 = arith.constant 3.200000e+01 : f32
    %118 = vector.broadcast %cst_30 : f32 to vector<32x1xf32>
    %119 = arith.divf %117, %118 : vector<32x1xf32>
    %120 = vector.broadcast %119 : vector<32x1xf32> to vector<32x32xf32>
    %121 = arith.subf %111, %120 : vector<32x32xf32>
    %122 = arith.mulf %121, %121 : vector<32x32xf32>
    %cst_31 = arith.constant dense<0.000000e+00> : vector<32xf32>
    %123 = vector.multi_reduction <add>, %122, %cst_31 [1] : vector<32x32xf32> to vector<32xf32>
    %124 = vector.shape_cast %123 : vector<32xf32> to vector<32x1xf32>
    %cst_32 = arith.constant 3.200000e+01 : f32
    %125 = vector.broadcast %cst_32 : f32 to vector<32x1xf32>
    %126 = arith.divf %124, %125 : vector<32x1xf32>
    %127 = vector.broadcast %119 : vector<32x1xf32> to vector<32x32xf32>
    %128 = arith.subf %111, %127 : vector<32x32xf32>
    %cst_33 = arith.constant 9.99999974E-6 : f32
    %129 = vector.broadcast %cst_33 : f32 to vector<32x1xf32>
    %130 = arith.addf %126, %129 : vector<32x1xf32>
    %131 = math.rsqrt %130 : vector<32x1xf32>
    %132 = vector.broadcast %131 : vector<32x1xf32> to vector<32x32xf32>
    %133 = arith.mulf %128, %132 : vector<32x32xf32>
    %134 = vector.broadcast %113 : vector<1x32xf32> to vector<32x32xf32>
    %135 = arith.mulf %133, %134 : vector<32x32xf32>
    %136 = vector.broadcast %115 : vector<1x32xf32> to vector<32x32xf32>
    %137 = arith.addf %135, %136 : vector<32x32xf32>
    %138 = arith.truncf %137 : vector<32x32xf32> to vector<32x32xbf16>
    %c0_34 = arith.constant 0 : index
    %c0_35 = arith.constant 0 : index
    %c0_36 = arith.constant 0 : index
    %139 = vector.load %arg9[%c0_34, %c0_35, %c0_36] : memref<1x32x64xbf16, #tpu.memory_space<vmem>>, vector<1x32x64xbf16>
    %140 = vector.shape_cast %139 : vector<1x32x64xbf16> to vector<32x64xbf16>
    %cst_37 = arith.constant dense<0.000000e+00> : vector<32x64xf32>
    %141 = tpu.matmul %138, %140, %cst_37 {dimension_numbers = #tpu.dot_dimension_numbers<[1], [0], [0], [1], [0, 0, 1, 1], [], []>} : vector<32x32xbf16>, vector<32x64xbf16>, vector<32x64xf32> -> vector<32x64xf32>
    %c0_38 = arith.constant 0 : index
    %c0_39 = arith.constant 0 : index
    %c0_40 = arith.constant 0 : index
    %142 = vector.load %arg10[%c0_38, %c0_39, %c0_40] : memref<1x1x64xf32, #tpu.memory_space<vmem>>, vector<1x1x64xf32>
    %143 = vector.shape_cast %142 : vector<1x1x64xf32> to vector<1x64xf32>
    %144 = vector.broadcast %143 : vector<1x64xf32> to vector<32x64xf32>
    %145 = arith.addf %141, %144 : vector<32x64xf32>
    %146 = arith.mulf %145, %145 : vector<32x64xf32>
    %147 = arith.mulf %145, %146 : vector<32x64xf32>
    %cst_41 = arith.constant 4.471500e-02 : f32
    %148 = vector.broadcast %cst_41 : f32 to vector<32x64xf32>
    %149 = arith.mulf %148, %147 : vector<32x64xf32>
    %150 = arith.addf %145, %149 : vector<32x64xf32>
    %cst_42 = arith.constant 0.797884583 : f32
    %151 = vector.broadcast %cst_42 : f32 to vector<32x64xf32>
    %152 = arith.mulf %151, %150 : vector<32x64xf32>
    %153 = math.tanh %152 : vector<32x64xf32>
    %cst_43 = arith.constant 1.000000e+00 : f32
    %154 = vector.broadcast %cst_43 : f32 to vector<32x64xf32>
    %155 = arith.addf %154, %153 : vector<32x64xf32>
    %cst_44 = arith.constant 5.000000e-01 : f32
    %156 = vector.broadcast %cst_44 : f32 to vector<32x64xf32>
    %157 = arith.mulf %156, %155 : vector<32x64xf32>
    %158 = arith.mulf %145, %157 : vector<32x64xf32>
    %159 = arith.truncf %158 : vector<32x64xf32> to vector<32x64xbf16>
    %c0_45 = arith.constant 0 : index
    %c0_46 = arith.constant 0 : index
    %c0_47 = arith.constant 0 : index
    %160 = vector.load %arg11[%c0_45, %c0_46, %c0_47] : memref<1x64x32xbf16, #tpu.memory_space<vmem>>, vector<1x64x32xbf16>
    %161 = vector.shape_cast %160 : vector<1x64x32xbf16> to vector<64x32xbf16>
    %cst_48 = arith.constant dense<0.000000e+00> : vector<32x32xf32>
    %162 = tpu.matmul %159, %161, %cst_48 {dimension_numbers = #tpu.dot_dimension_numbers<[1], [0], [0], [1], [0, 0, 1, 1], [], []>} : vector<32x64xbf16>, vector<64x32xbf16>, vector<32x32xf32> -> vector<32x32xf32>
    %c0_49 = arith.constant 0 : index
    %c0_50 = arith.constant 0 : index
    %c0_51 = arith.constant 0 : index
    %163 = vector.load %arg12[%c0_49, %c0_50, %c0_51] : memref<1x1x32xf32, #tpu.memory_space<vmem>>, vector<1x1x32xf32>
    %164 = vector.shape_cast %163 : vector<1x1x32xf32> to vector<1x32xf32>
    %165 = vector.broadcast %164 : vector<1x32xf32> to vector<32x32xf32>
    %166 = arith.addf %162, %165 : vector<32x32xf32>
    %167 = arith.addf %166, %137 : vector<32x32xf32>
    %c0_52 = arith.constant 0 : index
    %c0_53 = arith.constant 0 : index
    %c0_54 = arith.constant 0 : index
    %168 = vector.load %arg13[%c0_52, %c0_53, %c0_54] : memref<1x1x32xf32, #tpu.memory_space<vmem>>, vector<1x1x32xf32>
    %169 = vector.shape_cast %168 : vector<1x1x32xf32> to vector<1x32xf32>
    %c0_55 = arith.constant 0 : index
    %c0_56 = arith.constant 0 : index
    %c0_57 = arith.constant 0 : index
    %170 = vector.load %arg14[%c0_55, %c0_56, %c0_57] : memref<1x1x32xf32, #tpu.memory_space<vmem>>, vector<1x1x32xf32>
    %171 = vector.shape_cast %170 : vector<1x1x32xf32> to vector<1x32xf32>
    %cst_58 = arith.constant dense<0.000000e+00> : vector<32xf32>
    %172 = vector.multi_reduction <add>, %167, %cst_58 [1] : vector<32x32xf32> to vector<32xf32>
    %173 = vector.shape_cast %172 : vector<32xf32> to vector<32x1xf32>
    %cst_59 = arith.constant 3.200000e+01 : f32
    %174 = vector.broadcast %cst_59 : f32 to vector<32x1xf32>
    %175 = arith.divf %173, %174 : vector<32x1xf32>
    %176 = vector.broadcast %175 : vector<32x1xf32> to vector<32x32xf32>
    %177 = arith.subf %167, %176 : vector<32x32xf32>
    %178 = arith.mulf %177, %177 : vector<32x32xf32>
    %cst_60 = arith.constant dense<0.000000e+00> : vector<32xf32>
    %179 = vector.multi_reduction <add>, %178, %cst_60 [1] : vector<32x32xf32> to vector<32xf32>
    %180 = vector.shape_cast %179 : vector<32xf32> to vector<32x1xf32>
    %cst_61 = arith.constant 3.200000e+01 : f32
    %181 = vector.broadcast %cst_61 : f32 to vector<32x1xf32>
    %182 = arith.divf %180, %181 : vector<32x1xf32>
    %183 = vector.broadcast %175 : vector<32x1xf32> to vector<32x32xf32>
    %184 = arith.subf %167, %183 : vector<32x32xf32>
    %cst_62 = arith.constant 9.99999974E-6 : f32
    %185 = vector.broadcast %cst_62 : f32 to vector<32x1xf32>
    %186 = arith.addf %182, %185 : vector<32x1xf32>
    %187 = math.rsqrt %186 : vector<32x1xf32>
    %188 = vector.broadcast %187 : vector<32x1xf32> to vector<32x32xf32>
    %189 = arith.mulf %184, %188 : vector<32x32xf32>
    %190 = vector.broadcast %169 : vector<1x32xf32> to vector<32x32xf32>
    %191 = arith.mulf %189, %190 : vector<32x32xf32>
    %192 = vector.broadcast %171 : vector<1x32xf32> to vector<32x32xf32>
    %193 = arith.addf %191, %192 : vector<32x32xf32>
    %c0_63 = arith.constant 0 : index
    %c0_64 = arith.constant 0 : index
    %194 = vector.load %arg15[%c0_63, %c0_64] : memref<32x32xf32, #tpu.memory_space<vmem>>, vector<32x32xf32>
    tpu.vector_store %arg15[%c0_63, %c0_64], %193 {strides = array<i32>} : memref<32x32xf32, #tpu.memory_space<vmem>>, vector<32x32xf32>,
    return
  }
  func.func @transform_0(%arg0: i32) -> (i32, i32) {
    %c0_i32 = arith.constant 0 : i32
    %c0_i32_0 = arith.constant 0 : i32
    %c0_i32_1 = arith.constant 0 : i32
    return %c0_i32, %c0_i32_0 : i32, i32
  }
  func.func @transform_1(%arg0: i32) -> (i32, i32, i32) {
    %c0_i32 = arith.constant 0 : i32
    %c0_i32_0 = arith.constant 0 : i32
    %c0_i32_1 = arith.constant 0 : i32
    %c0_i32_2 = arith.constant 0 : i32
    return %c0_i32, %c0_i32_0, %c0_i32_1 : i32, i32, i32
  }
  func.func @transform_2(%arg0: i32) -> (i32, i32, i32) {
    %c0_i32 = arith.constant 0 : i32
    %c0_i32_0 = arith.constant 0 : i32
    %c0_i32_1 = arith.constant 0 : i32
    return %arg0, %c0_i32, %c0_i32_0 : i32, i32, i32
  }
  func.func @transform_3(%arg0: i32) -> (i32, i32, i32) {
    %c0_i32 = arith.constant 0 : i32
    %c0_i32_0 = arith.constant 0 : i32
    %c0_i32_1 = arith.constant 0 : i32
    return %arg0, %c0_i32, %c0_i32_0 : i32, i32, i32
  }
  func.func @transform_4(%arg0: i32) -> (i32, i32, i32) {
    %c0_i32 = arith.constant 0 : i32
    %c0_i32_0 = arith.constant 0 : i32
    %c0_i32_1 = arith.constant 0 : i32
    return %arg0, %c0_i32, %c0_i32_0 : i32, i32, i32
  }
  func.func @transform_5(%arg0: i32) -> (i32, i32, i32) {
    %c0_i32 = arith.constant 0 : i32
    %c0_i32_0 = arith.constant 0 : i32
    %c0_i32_1 = arith.constant 0 : i32
    return %arg0, %c0_i32, %c0_i32_0 : i32, i32, i32
  }
  func.func @transform_6(%arg0: i32) -> (i32, i32, i32) {
    %c0_i32 = arith.constant 0 : i32
    %c0_i32_0 = arith.constant 0 : i32
    %c0_i32_1 = arith.constant 0 : i32
    return %arg0, %c0_i32, %c0_i32_0 : i32, i32, i32
  }
  func.func @transform_7(%arg0: i32) -> (i32, i32, i32) {
    %c0_i32 = arith.constant 0 : i32
    %c0_i32_0 = arith.constant 0 : i32
    %c0_i32_1 = arith.constant 0 : i32
    return %arg0, %c0_i32, %c0_i32_0 : i32, i32, i32
  }
  func.func @transform_8(%arg0: i32) -> (i32, i32, i32) {
    %c0_i32 = arith.constant 0 : i32
    %c0_i32_0 = arith.constant 0 : i32
    %c0_i32_1 = arith.constant 0 : i32
    return %arg0, %c0_i32, %c0_i32_0 : i32, i32, i32
  }
  func.func @transform_9(%arg0: i32) -> (i32, i32, i32) {
    %c0_i32 = arith.constant 0 : i32
    %c0_i32_0 = arith.constant 0 : i32
    %c0_i32_1 = arith.constant 0 : i32
    return %arg0, %c0_i32, %c0_i32_0 : i32, i32, i32
  }
  func.func @transform_10(%arg0: i32) -> (i32, i32, i32) {
    %c0_i32 = arith.constant 0 : i32
    %c0_i32_0 = arith.constant 0 : i32
    %c0_i32_1 = arith.constant 0 : i32
    return %arg0, %c0_i32, %c0_i32_0 : i32, i32, i32
  }
  func.func @transform_11(%arg0: i32) -> (i32, i32, i32) {
    %c0_i32 = arith.constant 0 : i32
    %c0_i32_0 = arith.constant 0 : i32
    %c0_i32_1 = arith.constant 0 : i32
    return %arg0, %c0_i32, %c0_i32_0 : i32, i32, i32
  }
  func.func @transform_12(%arg0: i32) -> (i32, i32, i32) {
    %c0_i32 = arith.constant 0 : i32
    %c0_i32_0 = arith.constant 0 : i32
    %c0_i32_1 = arith.constant 0 : i32
    return %arg0, %c0_i32, %c0_i32_0 : i32, i32, i32
  }
  func.func @transform_13(%arg0: i32) -> (i32, i32, i32) {
    %c0_i32 = arith.constant 0 : i32
    %c0_i32_0 = arith.constant 0 : i32
    %c0_i32_1 = arith.constant 0 : i32
    return %arg0, %c0_i32, %c0_i32_0 : i32, i32, i32
  }
  func.func @transform_14(%arg0: i32) -> (i32, i32) {
    %c0_i32 = arith.constant 0 : i32
    %c0_i32_0 = arith.constant 0 : i32
    %c0_i32_1 = arith.constant 0 : i32
    return %c0_i32, %c0_i32_0 : i32, i32
  }
}

</mosaic_0001>

<bundles_post_ra>
// kernel: tpu_custom_call.1
= control target key start
LH: loop header
LB: loop body
LE: loop exit
PB: predicated region body
PF: predicated region fallthrough
CT: control target
= control target key end

     0   :  { %s3716_s0 = inlined_call_operand.vmem [shape: f32[32,32], index: 0, kind: input, shape index: {}]   ;;  %s3717_s1 = inlined_call_operand.vmem [shape: bf16[8,16,16], index: 1, kind: input, shape index: {}]   ;;  %s3718_s2 = inlined_call_operand.hbm [shape: bf16[2,32,96], index: 2, kind: input, shape index: {}]   ;;  %s3719_s3 = inlined_call_operand.hbm [shape: f32[2,1,96], index: 3, kind: input, shape index: {}]   ;;  %s3720_s4 = inlined_call_operand.hbm [shape: bf16[2,32,32], index: 4, kind: input, shape index: {}]   ;;  %s3721_s5 = inlined_call_operand.vmem [shape: f32[2,1,32], index: 5, kind: input, shape index: {}]   ;;  %s3722_s6 = inlined_call_operand.vmem [shape: f32[2,1,32], index: 6, kind: input, shape index: {}]   ;;  %s3723_s7 = inlined_call_operand.hbm [shape: f32[2,1,32], index: 7, kind: input, shape index: {}]   ;;  %s3724_s8 = inlined_call_operand.hbm [shape: bf16[2,32,64], index: 8, kind: input, shape index: {}]   ;;  %s3725_s9 = inlined_call_operand.vmem [shape: f32[2,1,64], index: 9, kind: input, shape index: {}]   ;;  %s3726_s10 = inlined_call_operand.vmem [shape: bf16[2,64,32], index: 10, kind: input, shape index: {}]   ;;  %s3727_s11 = inlined_call_operand.vmem [shape: f32[2,1,32], index: 11, kind: input, shape index: {}]   ;;  %s3728_s12 = inlined_call_operand.vmem [shape: f32[2,1,32], index: 12, kind: input, shape index: {}]   ;;  %s3729_s13 = inlined_call_operand.hbm [shape: f32[2,1,32], index: 13, kind: input, shape index: {}]   ;;  %s3730_s14 = inlined_call_operand.hbm [shape: f32[32,32], index: 14, kind: output, shape index: {}]  }
   0x1   :  { %3737 = sst [smem:[#allocation22_spill]] %s3716_s0 }
   0x2   :  { %3738 = sst [smem:[#allocation23_spill]] %s3717_s1 }
   0x3   :  { %3739 = sst [smem:[#allocation24_spill]] %s3718_s2 }
   0x4   :  { %3740 = sst [smem:[#allocation25_spill]] %s3719_s3 }
   0x5   :  { %3741 = sst [smem:[#allocation26_spill]] %s3722_s6 }
   0x6   :  { %3742 = sst [smem:[#allocation27_spill]] %s3723_s7 }
   0x7   :  { %3743 = sst [smem:[#allocation28_spill]] %s3725_s9 }
   0x8   :  { %3744 = sst [smem:[#allocation29_spill]] %s3726_s10 }
   0x9   :  { %3745 = sst [smem:[#allocation30_spill]] %s3727_s11 }
   0xa   :  { %3746 = sst [smem:[#allocation31_spill]] %s3728_s12 }
   0xb   :  { %3747 = sst [smem:[#allocation32_spill]] %s3730_s14 }
   0xc   :  { %19 = vsyncpa [#allocation3], 0 }
   0xd   :  { %21 = vsyncpa [#allocation3 + $0x1], 0 }
   0xe   :  { %22 = vsyncpa [#allocation6], 0 }
   0xf   :  { %24 = vsyncpa [#allocation6 + $0x1], 0 }
  0x10   :  { %25 = vsyncpa [#allocation9], 0 }
  0x11   :  { %27 = vsyncpa [#allocation9 + $0x1], 0 }
  0x12   :  { %28 = vsyncpa [#allocation12], 0 }
  0x13   :  { %30 = vsyncpa [#allocation12 + $0x1], 0 }
  0x14   :  { %31 = vsyncpa [#allocation4], 0  ;;  %s2987_s29 = smov 0   ;;  %s2989_s30 = smov 0  }
  0x15   :  { %s2991_s15 = smov 0   ;;  %s2993_s16 = smov 0  }
  0x16 LB: > { %3748 = sst [smem:[#allocation19_spill]] %s2893_s15  ;;  %s3006_s17 = sadd.s32 4294967295, %s2897_s16   ;;  %s2897_s16 = sphi %s2993_s16, %s3780_s16   ;;  %s2893_s15 = sphi %s2991_s15, %s3782_s15   ;;  %s2889_s30 = sphi %s2989_s30, %s3784_s30   ;;  %s2885_s29 = sphi %s2987_s29, %s3783_s29  }
  0x17   : > { %s3009_s18 = sadd.s32 1, %s2897_s16   ;;  %s86_s20 = sadd.s32 1, %s2893_s15 }
  0x18   : > { %3749 = sst [smem:[#allocation20_spill]] %s3009_s18  ;;  %s83_s19 = ssub.s32 %s2897_s16, %s3009_s18 }
  0x19   : > { %p84_p0 = scmp.eq.s32.totalorder %s83_s19, 0  ;;  %p93_p1 = scmp.ne.s32.totalorder %s2893_s15, %s2889_s30 }
  0x1a   : > { %p94_p2 = scmp.eq.s32.totalorder %s2897_s16, 0  ;;  %p99_p3 = scmp.ne.s32.totalorder %s2889_s30, %s2885_s29 }
  0x1b   : > { %s3019_s21 = scalar_select %p84_p0, %s2893_s15, %s86_s20  }
  0x1c   : > { %p95_p4 = por %p94_p2, %p93_p1  ;;  %p100_p5 = scmp.eq.s32.totalorder %s3006_s17, 0 }
  0x1d   : > { %3750 = sst [smem:[#allocation21_spill]] %s3019_s21  ;;  %p2459_p6 = scmp.lt.s32.totalorder %s2897_s16, 2 }
  0x1e   : > { %p3023_p7 = por %p100_p5, %p99_p3  ;;  %s3028_s23 = sand.u32 1, %s2893_s15  }
  0x1f   : > { %p3030_p8 = pnand %p2459_p6, %p95_p4  ;;  %s3734_s25 = sand.u32 1, %s2897_s16  }
  0x20   : > { %s3753_s3 = sld [smem:[#allocation25_spill]]  ;;  %s461_s19 = scalar_lea.vmem [#allocation5], %s3028_s23 }
  0x21   : > { %s468_s20 = sshll.u32 %s461_s19, 4  ;;  %s3042_s21 = scalar_lea.sflag [#allocation6], %s3734_s25  ;;  %s469_s20 = int_to_ptr.vmem [resolvable:$true] %s468_s20 }
  0x22   : > { %p3046_p10 = pneg %p3030_p8 }
  0x26   : > { %s464_s28 = scalar_lea.hbm %s3753_s3, %s2897_s16 }
  0x27   : > { %s466_s29 = sshll.u32 %s464_s28, 4  ;;  %s2646_s28 = scalar_lea.hbm %s3753_s3, 2  ;;  %s467_s29 = int_to_ptr.hbm [resolvable:$true] %s466_s29 }
  0x28   : > { %s2639_s15 = sshra.s32 %s467_s29, 4  ;;  %s2640_s15 = int_to_ptr.hbm [resolvable:$true] %s2639_s15 }
  0x29   : > { %s2641_s18 = scalar_lea.hbm %s2640_s15, 1  ;;  %p2647_p13 = scmp.lt.s32.totalorder %s2640_s15, %s3753_s3 }
  0x2a   : > { %p2642_p9 = scmp.ne.s32.totalorder %s2640_s15, %s2641_s18  ;;  %p2648_p0 = scmp.lt.s32.totalorder %s2646_s28, %s2641_s18 }
  0x2c   : > { %p2644_p11 = pnand %p3046_p10, %p2642_p9  ;;  %p2649_p1 = por %p2648_p0, %p2647_p13 }
  0x2e   : > { %p2645_p12 = pneg %p2644_p11 }
  0x30   : > { %p2650_p2 = pnand %p2649_p1, %p2645_p12 }
  0x32   : > { %2653 = shalt.err (!%p2650_p2)
}
  0x33   : > { %2446 = dma.hbm_to_vmem [thread:$0]  (!%p3030_p8), %s467_s29, 16, %s469_s20, %s3042_s21  }
  0x34   : > { %p2294_p3 = scmp.ge.s32.totalorder %s2897_s16, 1  ;;  %p589_p4 = scmp.lt.s32.totalorder %s2897_s16, 3 }
  0x35   : > { %s3756_s7 = sld [smem:[#allocation27_spill]]  ;;  %s512_s28 = scalar_lea.vmem [#allocation8], %s3028_s23 }
  0x36   : > { %p3063_p5 = pnand %p2294_p3, %p589_p4  ;;  %s519_s19 = sshll.u32 %s512_s28, 4  ;;  %s520_s19 = int_to_ptr.vmem [resolvable:$true] %s519_s19 }
  0x37   : > { %s3757_s3 = sand.u32 1, %s2897_s16  }
  0x38   : > { %s3074_s1 = scalar_lea.sflag [#allocation9], %s3757_s3 }
  0x3b   : > { %s515_s25 = scalar_lea.hbm %s3756_s7, %s2897_s16  ;;  %s2676_s15 = scalar_lea.hbm %s3756_s7, 2 }
  0x3c   : > { %s517_s27 = sshll.u32 %s515_s25, 4  ;;  %s518_s27 = int_to_ptr.hbm [resolvable:$true] %s517_s27 }
  0x3d   : > { %s2669_s0 = sshra.s32 %s518_s27, 4  ;;  %s2670_s0 = int_to_ptr.hbm [resolvable:$true] %s2669_s0 }
  0x3e   : > { %s2671_s29 = scalar_lea.hbm %s2670_s0, 1  ;;  %p2677_p12 = scmp.lt.s32.totalorder %s2670_s0, %s3756_s7 }
  0x3f   : > { %p2672_p6 = scmp.ne.s32.totalorder %s2670_s0, %s2671_s29  ;;  %p2678_p13 = scmp.lt.s32.totalorder %s2676_s15, %s2671_s29 }
  0x41   : > { %p2674_p9 = pnand %p2672_p6, %p3046_p10  ;;  %p2679_p0 = por %p2678_p13, %p2677_p12 }
  0x43   : > { %p2675_p11 = pneg %p2674_p9 }
  0x45   : > { %p2680_p1 = pnand %p2679_p0, %p2675_p11 }
  0x47   : > { %2683 = shalt.err (!%p2680_p1)
}
  0x48   : > { %2452 = dma.hbm_to_vmem [thread:$0]  (!%p3030_p8), %s518_s27, 16, %s520_s19, %s3074_s1  }
  0x49   : > { %s3088_s3 = sshll.u32 %s3028_s23, 4  ;;  %s3091_s12 = sshll.u32 %s2897_s16, 4 }
  0x4a   : > { %s3758_s2 = sld [smem:[#allocation24_spill]]  ;;  %s440_s20 = scalar_lea.vmem [#allocation2], %s3088_s3 }
  0x4b   : > { %s448_s15 = sshll.u32 %s440_s20, 4  ;;  %s437_s25 = scalar_lea.sflag [#allocation3], %s3028_s23  ;;  %s449_s15 = int_to_ptr.vmem [resolvable:$true] %s448_s15 }
  0x50   : > { %s445_s29 = scalar_lea.hbm %s3758_s2, %s3091_s12  ;;  %s2706_s10 = scalar_lea.hbm %s3758_s2, 32 }
  0x51   : > { %s446_s18 = sshll.u32 %s445_s29, 4  ;;  %s447_s18 = int_to_ptr.hbm [resolvable:$true] %s446_s18 }
  0x52   : > { %s2699_s7 = sshra.s32 %s447_s18, 4  ;;  %s2700_s7 = int_to_ptr.hbm [resolvable:$true] %s2699_s7 }
  0x53   : > { %s2701_s11 = scalar_lea.hbm %s2700_s7, 16  ;;  %p2707_p6 = scmp.lt.s32.totalorder %s2700_s7, %s3758_s2 }
  0x54   : > { %p2702_p2 = scmp.ne.s32.totalorder %s2700_s7, %s2701_s11  ;;  %p2708_p9 = scmp.lt.s32.totalorder %s2706_s10, %s2701_s11 }
  0x56   : > { %p2704_p3 = pnand %p2702_p2, %p3046_p10  ;;  %p2709_p11 = por %p2708_p9, %p2707_p6 }
  0x58   : > { %p2705_p4 = pneg %p2704_p3 }
  0x5a   : > { %p2710_p12 = pnand %p2709_p11, %p2705_p4 }
  0x5c   : > { %2713 = shalt.err (!%p2710_p12)
}
  0x5d   : > { %s2899_s0 = smov 64   ;;  %s2900_s29 = smov 4  }
  0x5e   : > { %2443 = dma.hbm_to_vmem [thread:$0]  (!%p3030_p8), %s447_s18, 256, %s449_s15, %s437_s25, %s2899_s0, %s2899_s0, %s2900_s29  }
  0x5f   : > { %s484_s9 = scalar_lea.hbm %s3720_s4, %s3091_s12  ;;  %s479_s7 = scalar_lea.vmem [#allocation7], %s3088_s3 }
  0x60   : > { %s487_s10 = sshll.u32 %s479_s7, 4  ;;  %s485_s11 = sshll.u32 %s484_s9, 4  ;;  %s488_s10 = int_to_ptr.vmem [resolvable:$true] %s487_s10  ;;  %s486_s11 = int_to_ptr.hbm [resolvable:$true] %s485_s11 }
  0x61   : > { %s2729_s19 = sshra.s32 %s486_s11, 4  ;;  %s2736_s15 = scalar_lea.hbm %s3720_s4, 32  ;;  %s2730_s19 = int_to_ptr.hbm [resolvable:$true] %s2729_s19 }
  0x62   : > { %s2731_s28 = scalar_lea.hbm %s2730_s19, 16  ;;  %p2737_p2 = scmp.lt.s32.totalorder %s2730_s19, %s3720_s4 }
  0x63   : > { %p2732_p13 = scmp.ne.s32.totalorder %s2730_s19, %s2731_s28  ;;  %p2738_p3 = scmp.lt.s32.totalorder %s2736_s15, %s2731_s28 }
  0x65   : > { %p2734_p0 = pnand %p2732_p13, %p3046_p10  ;;  %p2739_p4 = por %p2738_p3, %p2737_p2 }
  0x67   : > { %p2735_p1 = pneg %p2734_p0 }
  0x69   : > { %p2740_p6 = pnand %p2739_p4, %p2735_p1 }
  0x6b   : > { %2743 = shalt.err (!%p2740_p6)
}
  0x6c   : > { %2449 = dma.hbm_to_vmem [thread:$0]  (!%p3030_p8), %s486_s11, 256, %s488_s10, %s3042_s21, %s2899_s0, %s2899_s0, %s2900_s29  }
  0x6d   : > { %s535_s20 = scalar_lea.hbm %s3724_s8, %s3091_s12  ;;  %s530_s27 = scalar_lea.vmem [#allocation10], %s3088_s3 }
  0x6e   : > { %s538_s9 = sshll.u32 %s530_s27, 4  ;;  %s536_s7 = sshll.u32 %s535_s20, 4  ;;  %s539_s9 = int_to_ptr.vmem [resolvable:$true] %s538_s9  ;;  %s537_s7 = int_to_ptr.hbm [resolvable:$true] %s536_s7 }
  0x6f   : > { %s2759_s19 = sshra.s32 %s537_s7, 4  ;;  %s2766_s21 = scalar_lea.hbm %s3724_s8, 32  ;;  %s2760_s19 = int_to_ptr.hbm [resolvable:$true] %s2759_s19 }
  0x70   : > { %s2761_s28 = scalar_lea.hbm %s2760_s19, 16  ;;  %p2767_p13 = scmp.lt.s32.totalorder %s2760_s19, %s3724_s8 }
  0x71   : > { %p2762_p9 = scmp.ne.s32.totalorder %s2760_s19, %s2761_s28  ;;  %p2768_p0 = scmp.lt.s32.totalorder %s2766_s21, %s2761_s28 }
  0x73   : > { %p2764_p11 = pnand %p2762_p9, %p3046_p10  ;;  %p2769_p1 = por %p2768_p0, %p2767_p13 }
  0x75   : > { %p2765_p12 = pneg %p2764_p11 }
  0x77   : > { %p2770_p2 = pnand %p2769_p1, %p2765_p12 }
  0x79   : > { %2773 = shalt.err (!%p2770_p2)
}
  0x7a   : > { %2455 = dma.hbm_to_vmem [thread:$0]  (!%p3030_p8), %s537_s7, 256, %s539_s9, %s3074_s1, %s2899_s0, %s2899_s0, %s2900_s29  }
  0x7b   : > { %s580_s25 = scalar_lea.hbm %s3729_s13, %s2897_s16  ;;  %s577_s6 = scalar_lea.vmem [#allocation11], %s3028_s23 }
  0x7c   : > { %s582_s2 = sshll.u32 %s580_s25, 4  ;;  %s584_s20 = sshll.u32 %s577_s6, 4  ;;  %s583_s2 = int_to_ptr.hbm [resolvable:$true] %s582_s2  ;;  %s585_s20 = int_to_ptr.vmem [resolvable:$true] %s584_s20 }
  0x7d   : > { %s575_s27 = scalar_lea.sflag [#allocation12], %s3028_s23  ;;  %s2789_s19 = sshra.s32 %s583_s2, 4  ;;  %s2790_s19 = int_to_ptr.hbm [resolvable:$true] %s2789_s19 }
  0x7e   : > { %s2791_s28 = scalar_lea.hbm %s2790_s19, 1  ;;  %s2796_s1 = scalar_lea.hbm %s3729_s13, 2 }
  0x7f   : > { %p2792_p3 = scmp.ne.s32.totalorder %s2790_s19, %s2791_s28  ;;  %p2797_p9 = scmp.lt.s32.totalorder %s2790_s19, %s3729_s13 }
  0x80   : > { %p2798_p11 = scmp.lt.s32.totalorder %s2796_s1, %s2791_s28 }
  0x81   : > { %p2794_p4 = pnand %p2792_p3, %p3046_p10 }
  0x82   : > { %p2799_p12 = por %p2798_p11, %p2797_p9 }
  0x83   : > { %p2795_p6 = pneg %p2794_p4 }
  0x85   : > { %p2800_p13 = pnand %p2799_p12, %p2795_p6 }
  0x87   : > { %2803 = shalt.err (!%p2800_p13)
}
  0x88   : > { %2458 = dma.hbm_to_vmem [thread:$0]  (!%p3030_p8), %s583_s2, 16, %s585_s20, %s575_s27  }
  0x89   : > { %593 = sbr.rel (%p3063_p5) target bundleno = 2270 (0x8de), region = 76  ;;  %s3169_s14 = sand.u32 (!%p3063_p5), 1, %s2889_s30  }
  0x8a   : > { %s3172_s16 = sshll.u32 (!%p3063_p5), %s3169_s14, 4  ;;  %s596_s23 = scalar_lea.sflag (!%p3063_p5), [#allocation3], %s3169_s14 }
  0x8b   : > { %s599_s9 = scalar_lea.vmem (!%p3063_p5), [#allocation2], %s3172_s16 }
  0x8e   : > { %2864 = dma.done.wait (%p3023_p7), %s596_s23, 256  }
  0x8f   : > { %2866 = vsyncadd (%p3023_p7), %s596_s23, 4294967040  ;;  %s605_s24 = sand.u32 1, %s3006_s17  }
  0x90   : > { %s606_s26 = scalar_lea.sflag [#allocation6], %s605_s24 }
  0x91   : > { %2868 = dma.done.wait (%p3023_p7), %s606_s26, 272  }
  0x92   : > { %2870 = vsyncadd (%p3023_p7), %s606_s26, 4294967024  ;;  %s625_s10 = scalar_lea.sflag [#allocation9], %s605_s24 }
  0x93   : > { %2872 = dma.done.wait (%p3023_p7), %s625_s10, 272  }
  0x94   : > { %2874 = vsyncadd (%p3023_p7), %s625_s10, 4294967024  ;;  %s644_s12 = scalar_lea.sflag [#allocation12], %s3169_s14 }
  0x95   : > { %2876 = dma.done.wait (%p3023_p7), %s644_s12, 16  }
  0x96   : > { %2878 = vsyncadd (%p3023_p7), %s644_s12, 4294967280  ;;  %p729_p8 = scmp.lt.s32.totalorder %s3006_s17, 1  ;;  %s3759_s15 = sld [smem:[#allocation26_spill]] }
  0x97   : > { %s3760_s0 = sld [smem:[#allocation28_spill]]  ;;  %p2300_p7 = scmp.ne.s32.totalorder %s3006_s17, 0 }
  0x98   : > { %s3201_s2 = scalar_select %p729_p8, %s3006_s17, 1 }
  0x99   : > { %s3761_s10 = sld [smem:[#allocation29_spill]] }
  0x9a   : > { %s2372_s23 = sshll.u32 %s3201_s2, 5  ;;  %s3762_s25 = sld [smem:[#allocation30_spill]] }
  0x9b   : > { %s3763_s21 = sld [smem:[#allocation31_spill]] }
  0x9c   : > { %s734_s22 = scalar_lea.vmem %s3759_s15, %s3201_s2  ;;  %s3764_s15 = sld [smem:[#allocation22_spill]] (!%p2300_p7) }
  0x9d   : > { %s737_s29 = scalar_lea.vmem %s3760_s0, %s3201_s2  ;;  %753 = sbr.rel (%p2300_p7) target bundleno = 167 (0xa7), region = 104 }
  0x9f   : > { %s3219_s12 = scalar_lea.vmem %s3761_s10, %s2372_s23 }
  0xa0   : > { %s745_s11 = scalar_lea.vmem %s3762_s25, %s3201_s2 }
  0xa1   : > { %s748_s7 = scalar_lea.vmem %s3763_s21, %s3201_s2 }
  0xa2   : > { %s3765_s18 = smov %s3764_s15  ;;  %v754_v0 = vld [vmem:[%s3764_s15] sm:$0xff]  ;;  %vm758_vm0 = vcmask 261120  }
  0xa3   : > { %v755_v1 = vld [vmem:[%s3765_s18 + $0x8] sm:$0xff]  ;;  %v756_v2 = vld [vmem:[%s3765_s18 + $0x10] sm:$0xff]  ;;  %759 = vst.msk [vmem:[#allocation13] sm:$0xff] %vm758_vm0, %v754_v0  ;;  %v757_v3 = vld [vmem:[%s3765_s18 + $0x18] sm:$0xff] }
  0xa4   : > { %760 = vst.msk [vmem:[#allocation13 + $0x8] sm:$0xff] %vm758_vm0, %v755_v1 }
  0xa5   : > { %761 = vst.msk [vmem:[#allocation13 + $0x10] sm:$0xff] %vm758_vm0, %v756_v2 }
  0xa6   : > { %762 = vst.msk [vmem:[#allocation13 + $0x18] sm:$0xff] %vm758_vm0, %v757_v3 }
  0xa7 PF: > { %v2374_v4 = vld [vmem:[%s599_s9 + $0x8] sm:$0xff]  ;;  %v2373_v5 = vld [vmem:[%s599_s9] sm:$0xff]  ;;  %vm789_vm1 = vcmask 261120   ;;  %s3766_s21 = scalar_lea.vmem [#allocation5], %s3169_s14  ;;  %s2901_s9 = smov 104   ;;  %vm947_vm2 = vcmask 64512  }
  0xa8   : > { %802 = vmatpush.bf16.msra.mxu0 %v2374_v4  ;;  %2422 = vmatpush.bf16.msra.mxu1 %v2374_v4  ;;  %v2537_v12 = vld [vmem:[%s3766_s21] ss:$0 sm:$0xff]  ;;  %s2902_s27 = smov 112   ;;  %s2903_s26 = smov 120   ;;  %vm1192_vm3 = vcmask 130048   ;;  %vm1613_vm4 = vcmask 195584  }
  0xa9   : > { %s2904_s10 = smov 96   ;;  %s2905_s6 = smov 64  }
  0xaa   : > { %v763_v6 = vld [vmem:[#allocation13] sm:$0xff]  ;;  %s3767_s28 = sld [smem:[#allocation23_spill]]  ;;  %s2907_s15 = smov 8  }
  0xab   : > { %v764_v7 = vld [vmem:[#allocation13 + $0x8] sm:$0xff]  ;;  %s2908_s1 = smov 24   ;;  %s3768_s0 = scalar_lea.vmem [#allocation7], %s3172_s16 }
  0xac   : > { %v765_v8 = vld [vmem:[#allocation13 + $0x10] sm:$0xff]  ;;  %v767_v10 = vpack.c.bf16 %v764_v7, %v763_v6  ;;  %803 = vmatpush.bf16.msra.mxu0 %v2373_v5  ;;  %2423 = vmatpush.bf16.msra.mxu1 %v2373_v5  ;;  %s3769_s23 = smov %s3768_s0  ;;  %s3770_s3 = scalar_lea.vmem %s3721_s5, %s3201_s2 }
  0xad   : > { %v766_v9 = vld [vmem:[#allocation13 + $0x18] sm:$0xff]  ;;  %s3771_s21 = scalar_lea.vmem [#allocation10], %s3172_s16  ;;  %s3779_s25 = sld [smem:[#allocation32_spill]] }
  0xae   : > { %v768_v11 = vpack.c.bf16 %v766_v9, %v765_v8  ;;  %p2460_p10 = scmp.eq.s32.totalorder %s3006_s17, 1 }
  0xaf   : > { %2309 = vmatmul.msk.bf16.vlgmr.msra.gmra.mxu0 %vm789_vm1, %v767_v10 }
  0xb0   : > { %2310 = vmatmul.msk.bf16.vlgmr.msra.gmra.mxu1 %vm789_vm1, %v768_v11 }
 0x12c   : > { %v805_v13 = vpop.f32.mrf.mxu0 }
 0x12d   : > { %v810_v14 = vpop.f32.mrf.mxu1  ;;  %v806_v15 = vadd.f32 %v2537_v12, %v805_v13 }
 0x12e   : > { %v811_v16 = vadd.f32 %v2537_v12, %v810_v14 }
 0x12f   : > { %829 = vrot.lane.b32.xlu2 %v806_v15, %s2901_s9  ;;  %823 = vrot.lane.b32.xlu1 %v806_v15, %s2902_s27  ;;  %v855_v19 = vmul.f32 0.35355338, %v806_v15  ;;  %v887_v41 = vpack.c.bf16 %v806_v15, %v806_v15 }
 0x130   : > { %817 = vrot.lane.b32.xlu0 %v806_v15, %s2903_s26  ;;  %v863_v17 = vmul.f32 0.35355338, %v811_v16  ;;  %v895_v18 = vpack.c.bf16 %v811_v16, %v811_v16 }
 0x131   : > { %v871_v28 = vpack.c.bf16 %v855_v19, %v855_v19  ;;  %v942_v43 = vunpack.c.l.b16 %v887_v41 }
 0x132   : > { %v879_v24 = vpack.c.bf16 %v863_v17, %v863_v17  ;;  %v1071_v25 = vunpack.c.l.b16 %v895_v18 }
 0x133   : > { %v3258_v35 = vunpack.c.l.b16 %v871_v28 }
 0x134   : > { %v807_v20 = vpop.f32.mrf.mxu0  ;;  %v3254_v33 = vunpack.c.l.b16 %v879_v24 }
 0x135   : > { %v812_v21 = vpop.f32.mrf.mxu1  ;;  %v808_v22 = vadd.f32 %v2537_v12, %v807_v20 }
 0x136   : > { %v813_v23 = vadd.f32 %v2537_v12, %v812_v21 }
 0x137   : > { %831 = vrot.lane.b32.xlu2 %v808_v22, %s2901_s9  ;;  %825 = vrot.lane.b32.xlu1 %v808_v22, %s2902_s27  ;;  %v856_v27 = vmul.f32 0.35355338, %v808_v22  ;;  %v888_v40 = vpack.c.bf16 %v808_v22, %v808_v22 }
 0x138   : > { %v896_v26 = vpack.c.bf16 %v813_v23, %v813_v23  ;;  %v864_v29 = vmul.f32 0.35355338, %v813_v23  ;;  %819 = vrot.lane.b32.xlu0 %v808_v22, %s2903_s26 }
 0x139   : > { %v872_v31 = vpack.c.bf16 %v856_v27, %v856_v27  ;;  %v943_v42 = vunpack.c.l.b16 %v888_v40 }
 0x13a   : > { %v1072_v30 = vunpack.c.l.b16 %v896_v26  ;;  %v880_v32 = vpack.c.bf16 %v864_v29, %v864_v29 }
 0x13b   : > { %v3260_v36 = vunpack.c.l.b16 %v872_v31  ;;  %v3272_v44 = vpack.c.b16 %v943_v42, %v942_v43 }
 0x13c   : > { %v3256_v34 = vpack.c.b16 %v1072_v30, %v1071_v25  ;;  %v3262_v37 = vunpack.c.l.b16 %v880_v32 }
 0x13d   : > { %v939_v38 = vpack.c.b16 %v3260_v36, %v3258_v35 }
 0x13e   : > { %v1068_v39 = vpack.c.b16 %v3262_v37, %v3254_v33  ;;  %v2417_v37 = vld [vmem:[%s3767_s28 + $0x18] sm:$0xff]  }
 0x13f   : > { %843 = vrot.lane.b32.xlu2 %v811_v16, %s2902_s27  ;;  %839 = vrot.lane.b32.xlu1 %v813_v23, %s2903_s26 }
 0x140   : > { %837 = vrot.lane.b32.xlu0 %v811_v16, %s2903_s26 }
 0x147   : > { %851 = vrot.lane.b32.xlu2 %v813_v23, %s2901_s9  ;;  %849 = vrot.lane.b32.xlu1 %v811_v16, %s2901_s9  ;;  %s3772_s9 = smov %s3771_s21 }
 0x148   : > { %845 = vrot.lane.b32.xlu0 %v813_v23, %s2902_s27 }
 0x150   : > { %945 = vrot.lane.b32.xlu0 %v3272_v44, %s2904_s10 }
 0x189   : > { %v830_v45 = vpop.permute.xlu2 %829 }
 0x18a   : > { %v861_v46 = vmul.f32 0.35355338, %v830_v45  ;;  %v893_v47 = vpack.c.bf16 %v830_v45, %v830_v45 }
 0x18c   : > { %v877_v49 = vpack.c.bf16 %v861_v46, %v861_v46  ;;  %v1039_v52 = vunpack.c.l.b16 %v893_v47 }
 0x18e   : > { %v3276_v55 = vunpack.c.l.b16 %v877_v49 }
 0x191   : > { %v832_v48 = vpop.permute.xlu2 %831 }
 0x192   : > { %v862_v50 = vmul.f32 0.35355338, %v832_v48  ;;  %v894_v51 = vpack.c.bf16 %v832_v48, %v832_v48 }
 0x194   : > { %v878_v53 = vpack.c.bf16 %v862_v50, %v862_v50  ;;  %v1040_v54 = vunpack.c.l.b16 %v894_v51 }
 0x196   : > { %v3278_v56 = vunpack.c.l.b16 %v878_v53  ;;  %v3280_v57 = vpack.c.b16 %v1040_v54, %v1039_v52 }
 0x198   : > { %v1036_v58 = vpack.c.b16 %v3278_v56, %v3276_v55  ;;  %1042 = vrot.lane.b32.xlu0 %v3280_v57, %s2904_s10 }
 0x199   : > { %v844_v6 = vpop.permute.xlu2 %843 }
 0x19a   : > { %v867_v43 = vmul.f32 0.35355338, %v844_v6  ;;  %v899_v48 = vpack.c.bf16 %v844_v6, %v844_v6 }
 0x19c   : > { %v883_v53 = vpack.c.bf16 %v867_v43, %v867_v43 }
 0x1a1   : > { %v824_v59 = vpop.permute.xlu1 %823  ;;  %v852_v32 = vpop.permute.xlu2 %851 }
 0x1a2   : > { %v818_v60 = vpop.permute.xlu0 %817  ;;  %v859_v61 = vmul.f32 0.35355338, %v824_v59  ;;  %v891_v63 = vpack.c.bf16 %v824_v59, %v824_v59  ;;  %v902_v47 = vpack.c.bf16 %v852_v32, %v852_v32 }
 0x1a3   : > { %v857_v62 = vmul.f32 0.35355338, %v818_v60  ;;  %v889_v0 = vpack.c.bf16 %v818_v60, %v818_v60 }
 0x1a4   : > { %v875_v2 = vpack.c.bf16 %v859_v61, %v859_v61  ;;  %v1007_v10 = vunpack.c.l.b16 %v891_v63  ;;  %v1168_v60 = vunpack.c.l.b16 %v902_v47 }
 0x1a5   : > { %v873_v7 = vpack.c.bf16 %v857_v62, %v857_v62  ;;  %v975_v13 = vunpack.c.l.b16 %v889_v0  ;;  %v1135_v62 = vunpack.c.l.b16 %v899_v48 }
 0x1a6   : > { %v3286_v16 = vunpack.c.l.b16 %v875_v2  ;;  %v1130_v2 = vunpack.c.l.b16 %v883_v53 }
 0x1a7   : > { %v3290_v19 = vunpack.c.l.b16 %v873_v7 }
 0x1a9   : > { %v826_v1 = vpop.permute.xlu1 %825 }
 0x1aa   : > { %v860_v3 = vmul.f32 0.35355338, %v826_v1  ;;  %v892_v4 = vpack.c.bf16 %v826_v1, %v826_v1  ;;  %v820_v5 = vpop.permute.xlu0 %819 }
 0x1ab   : > { %v858_v8 = vmul.f32 0.35355338, %v820_v5  ;;  %v890_v9 = vpack.c.bf16 %v820_v5, %v820_v5 }
 0x1ac   : > { %v876_v11 = vpack.c.bf16 %v860_v3, %v860_v3  ;;  %v1008_v12 = vunpack.c.l.b16 %v892_v4 }
 0x1ad   : > { %v874_v14 = vpack.c.bf16 %v858_v8, %v858_v8  ;;  %v976_v15 = vunpack.c.l.b16 %v890_v9 }
 0x1ae   : > { %v3288_v17 = vunpack.c.l.b16 %v876_v11  ;;  %v1009_v18 = vpack.c.b16 %v1008_v12, %v1007_v10 }
 0x1af   : > { %v3292_v20 = vunpack.c.l.b16 %v874_v14  ;;  %v977_v21 = vpack.c.b16 %v976_v15, %v975_v13  ;;  %v870_v13 = vmul.f32 0.35355338, %v852_v32 }
 0x1b0   : > { %1010 = vrot.lane.b32.xlu2 %v1009_v18, %s2904_s10  ;;  %v1004_v22 = vpack.c.b16 %v3288_v17, %v3286_v16 }
 0x1b1   : > { %978 = vrot.lane.b32.xlu1 %v977_v21, %s2904_s10  ;;  %v840_v23 = vpop.permute.xlu1 %839  ;;  %v972_v24 = vpack.c.b16 %v3292_v20, %v3290_v19  ;;  %v886_v16 = vpack.c.bf16 %v870_v13, %v870_v13 }
 0x1b2   : > { %v866_v25 = vmul.f32 0.35355338, %v840_v23  ;;  %v898_v26 = vpack.c.bf16 %v840_v23, %v840_v23  ;;  %v838_v27 = vpop.permute.xlu0 %837 }
 0x1b3   : > { %v865_v28 = vmul.f32 0.35355338, %v838_v27  ;;  %v897_v29 = vpack.c.bf16 %v838_v27, %v838_v27  ;;  %v1163_v20 = vunpack.c.l.b16 %v886_v16 }
 0x1b4   : > { %v882_v30 = vpack.c.bf16 %v866_v25, %v866_v25  ;;  %v1104_v31 = vunpack.c.l.b16 %v898_v26  ;;  %v2384_v25 = vld [vmem:[%s3767_s28] sm:$0xff]  }
 0x1b5   : > { %v881_v40 = vpack.c.bf16 %v865_v28, %v865_v28  ;;  %v1103_v41 = vunpack.c.l.b16 %v897_v29  ;;  %v2385_v26 = vunpack.c.l.bf16 %v2384_v25 }
 0x1b6   : > { %v3300_v42 = vunpack.c.l.b16 %v882_v30  ;;  %v2386_v30 = vunpack.c.h.bf16 %v2384_v25 }
 0x1b7   : > { %v3302_v45 = vunpack.c.l.b16 %v881_v40  ;;  %v3304_v46 = vpack.c.b16 %v1104_v31, %v1103_v41  ;;  %v2416_v41 = vld [vmem:[%s3767_s28 + $0x10] sm:$0xff]  }
 0x1b9   : > { %v1100_v49 = vpack.c.b16 %v3300_v42, %v3302_v45  ;;  %1106 = vrot.lane.b32.xlu1 %v3304_v46, %s2904_s10  ;;  %v850_v50 = vpop.permute.xlu1 %849  ;;  %v2393_v45 = vunpack.c.l.bf16 %v2416_v41 }
 0x1ba   : > { %v901_v51 = vpack.c.bf16 %v850_v50, %v850_v50  ;;  %v846_v52 = vpop.permute.xlu0 %845  ;;  %v869_v56 = vmul.f32 0.35355338, %v850_v50  ;;  %v2420_v50 = vld [vmem:[%s3767_s28 + $0x30] sm:$0xff]  }
 0x1bb   : > { %v868_v54 = vmul.f32 0.35355338, %v846_v52  ;;  %v900_v59 = vpack.c.bf16 %v846_v52, %v846_v52 }
 0x1bc   : > { %v1167_v61 = vunpack.c.l.b16 %v901_v51  ;;  %v885_v14 = vpack.c.bf16 %v869_v56, %v869_v56  ;;  %v2409_v51 = vunpack.c.l.bf16 %v2420_v50  ;;  %v2421_v56 = vld [vmem:[%s3767_s28 + $0x38] sm:$0xff]  }
 0x1bd   : > { %v884_v63 = vpack.c.bf16 %v868_v54, %v868_v54  ;;  %v1136_v0 = vunpack.c.l.b16 %v900_v59  ;;  %v2398_v54 = vunpack.c.h.bf16 %v2417_v37 }
 0x1be   : > { %v3310_v1 = vpack.c.b16 %v1168_v60, %v1167_v61  ;;  %v1162_v19 = vunpack.c.l.b16 %v885_v14  ;;  %v2410_v61 = vunpack.c.h.bf16 %v2420_v50 }
 0x1bf   : > { %v1131_v3 = vunpack.c.l.b16 %v884_v63  ;;  %v3312_v4 = vpack.c.b16 %v1136_v0, %v1135_v62  ;;  %v2415_v0 = vld [vmem:[%s3767_s28 + $0x8] sm:$0xff]  }
 0x1c0   : > { %1170 = vrot.lane.b32.xlu0 %v3310_v1, %s2904_s10 }
 0x1c1   : > { %v1132_v5 = vpack.c.b16 %v1131_v3, %v1130_v2  ;;  %1074 = vrot.lane.b32.xlu1 %v3256_v34, %s2904_s10  ;;  %1138 = vrot.lane.b32.xlu2 %v3312_v4, %s2904_s10  ;;  %s3774_s10 = scalar_lea.vmem [#allocation8], %s3169_s14 }
 0x1c2   : > { %v946_v6 = vpop.permute.xlu0 %945 }
 0x1c3   : > { %v952_v7 = vsel %vm947_vm2, %v946_v6, 0  ;;  %v2389_v6 = vunpack.c.l.bf16 %v2415_v0 }
 0x1c4   : > { %961 = vmatpush.bf16.xpose.msrb.mxu1 %v952_v7 }
 0x1c8   : > { %1440 = vrot.lane.b32.xlu0 %v1009_v18, %s2905_s6 }
 0x1c9   : > { %1465 = vrot.lane.b32.xlu1 %v3280_v57, %s2905_s6  ;;  %1415 = vrot.lane.b32.xlu2 %v977_v21, %s2905_s6 }
 0x1cb   : > { %2311 = vmatmul.msk.bf16.vlgmr.msrb.gmra.mxu1 %vm947_vm2, %v939_v38 }
 0x20a   : > { %v1011_v8 = vpop.permute.xlu2 %1010  ;;  %v1043_v9 = vpop.permute.xlu0 %1042 }
 0x20b   : > { %v1048_v10 = vsel %vm947_vm2, %v1043_v9, 0  ;;  %v1016_v11 = vsel %vm947_vm2, %v1011_v8, 0 }
 0x20c   : > { %1025 = vmatpush.bf16.xpose.msra.mxu3 %v1016_v11  ;;  %1057 = vmatpush.bf16.xpose.msra.mxu1 %v1048_v10  ;;  %v2419_v10 = vld [vmem:[%s3767_s28 + $0x28] sm:$0xff]   ;;  %v2394_v11 = vunpack.c.h.bf16 %v2416_v41 }
 0x213   : > { %2313 = vmatmul.msk.bf16.vlgmr.msra.gmra.mxu3 %vm947_vm2, %v1004_v22  ;;  %2314 = vmatmul.msk.bf16.vlgmr.msra.gmra.mxu1 %vm947_vm2, %v1036_v58  ;;  %v1164_v22 = vpack.c.b16 %v1163_v20, %v1162_v19  ;;  %v2418_v20 = vld [vmem:[%s3767_s28 + $0x20] sm:$0xff]  }
 0x214   : > { %v2401_v25 = vunpack.c.l.bf16 %v2418_v20 }
 0x21b   : > { %v1139_v57 = vpop.permute.xlu2 %1138 }
 0x21c   : > { %v1144_v35 = vsel %vm947_vm2, %v1139_v57, 0 }
 0x21d   : > { %1153 = vmatpush.bf16.xpose.msrb.mxu0 %v1144_v35  ;;  %v2390_v35 = vunpack.c.h.bf16 %v2415_v0 }
 0x223   : > { %v979_v36 = vpop.permute.xlu1 %978  ;;  %v1416_v58 = vpop.permute.xlu2 %1415 }
 0x224   : > { %2317 = vmatmul.msk.bf16.vlgmr.msrb.gmra.mxu0 %vm947_vm2, %v1132_v5  ;;  %v984_v38 = vsel %vm947_vm2, %v979_v36, 0  ;;  %v2405_v36 = vunpack.c.l.bf16 %v2419_v10 }
 0x225   : > { %993 = vmatpush.bf16.xpose.msra.mxu2 %v984_v38 }
 0x22b   : > { %v1107_v12 = vpop.permute.xlu1 %1106 }
 0x22c   : > { %2312 = vmatmul.msk.bf16.vlgmr.msra.gmra.mxu2 %vm947_vm2, %v972_v24  ;;  %v1112_v55 = vsel %vm947_vm2, %v1107_v12, 0 }
 0x22d   : > { %1121 = vmatpush.bf16.xpose.msrb.mxu3 %v1112_v55 }
 0x232   : > { %v1171_v15 = vpop.permute.xlu0 %1170 }
 0x233   : > { %v1075_v17 = vpop.permute.xlu1 %1074  ;;  %v1176_v18 = vsel %vm947_vm2, %v1171_v15, 0  ;;  %v2413_v15 = vunpack.c.l.bf16 %v2421_v56 }
 0x234   : > { %2316 = vmatmul.msk.bf16.vlgmr.msrb.gmra.mxu3 %vm947_vm2, %v1100_v49  ;;  %v1080_v21 = vsel %vm947_vm2, %v1075_v17, 0  ;;  %1185 = vmatpush.bf16.xpose.msrb.mxu1 %v1176_v18 }
 0x235   : > { %1428 = vmatpush.bf16.msra.mxu3 %v1416_v58  ;;  %1089 = vmatpush.bf16.xpose.msrb.mxu2 %v1080_v21  ;;  %v2414_v21 = vunpack.c.h.bf16 %v2421_v56 }
 0x23a   : > { %v1441_v23 = vpop.permute.xlu0 %1440 }
 0x23b   : > { %v1466_v24 = vpop.permute.xlu1 %1465  ;;  %2318 = vmatmul.msk.bf16.vlgmr.msrb.gmra.mxu1 %vm947_vm2, %v1164_v22  ;;  %1453 = vmatpush.bf16.msra.mxu0 %v1441_v23 }
 0x23c   : > { %2315 = vmatmul.msk.bf16.vlgmr.msrb.gmra.mxu2 %vm947_vm2, %v1068_v39  ;;  %1478 = vmatpush.bf16.msra.mxu1 %v1466_v24  ;;  %v2397_v39 = vunpack.c.l.bf16 %v2417_v37  ;;  %v2406_v37 = vunpack.c.h.bf16 %v2419_v10 }
 0x248   : > { %v963_v27 = vpop.f32.mrf.mxu1 }
 0x249   : > { %v3355_v28 = vadd.f32 %v2385_v26, %v963_v27 }
 0x24b   : > { %v1193_v29 = vsel %vm1192_vm3, %v3355_v28, -inf }
 0x24c   : > { %1194 = vmax.xlane.f32.xlu1 %v1193_v29  ;;  %v2402_v29 = vunpack.c.h.bf16 %v2418_v20 }
 0x250   : > { %v965_v31 = vpop.f32.mrf.mxu1 }
 0x251   : > { %v3359_v32 = vadd.f32 %v2386_v30, %v965_v31 }
 0x253   : > { %v1196_v33 = vsel %vm1192_vm3, %v3359_v32, -inf }
 0x254   : > { %1197 = vmax.xlane.f32.xlu2 %v1196_v33 }
 0x290   : > { %v1059_v40 = vpop.f32.mrf.mxu1 }
 0x291   : > { %v3369_v42 = vadd.f32 %v2397_v39, %v1059_v40 }
 0x293   : > { %v1211_v43 = vsel %vm1192_vm3, %v3369_v42, -inf }
 0x294   : > { %1212 = vmax.xlane.f32.xlu2 %v1211_v43 }
 0x296   : > { %v1027_v47 = vpop.f32.mrf.mxu3 }
 0x297   : > { %v3373_v48 = vadd.f32 %v2393_v45, %v1027_v47 }
 0x298   : > { %v1061_v60 = vpop.f32.mrf.mxu1 }
 0x299   : > { %v1205_v49 = vsel %vm1192_vm3, %v3373_v48, -inf  ;;  %v3384_v62 = vadd.f32 %v2398_v54, %v1061_v60 }
 0x29a   : > { %1206 = vmax.xlane.f32.xlu1 %v1205_v49 }
 0x29b   : > { %v1214_v3 = vsel %vm1192_vm3, %v3384_v62, -inf }
 0x29e   : > { %v1029_v7 = vpop.f32.mrf.mxu3 }
 0x29f   : > { %v3402_v38 = vadd.f32 %v2394_v11, %v1029_v7 }
 0x2a1   : > { %v1155_v52 = vpop.f32.mrf.mxu0  ;;  %v1208_v17 = vsel %vm1192_vm3, %v3402_v38, -inf }
 0x2a2   : > { %v3380_v53 = vadd.f32 %v2409_v51, %v1155_v52 }
 0x2a4   : > { %v1229_v59 = vsel %vm1192_vm3, %v3380_v53, -inf }
 0x2a5   : > { %1230 = vmax.xlane.f32.xlu0 %v1229_v59 }
 0x2a9   : > { %v1157_v63 = vpop.f32.mrf.mxu0 }
 0x2aa   : > { %v3389_v2 = vadd.f32 %v2410_v61, %v1157_v63 }
 0x2ac   : > { %v1232_v5 = vsel %vm1192_vm3, %v3389_v2, -inf }
 0x2ad   : > { %1215 = vmax.xlane.f32.xlu0 %v1214_v3  ;;  %1233 = vmax.xlane.f32.xlu1 %v1232_v5 }
 0x2af   : > { %v995_v8 = vpop.f32.mrf.mxu2 }
 0x2b0   : > { %v3395_v9 = vadd.f32 %v2389_v6, %v995_v8 }
 0x2b2   : > { %v1199_v57 = vsel %vm1192_vm3, %v3395_v9, -inf }
 0x2b3   : > { %1200 = vmax.xlane.f32.xlu2 %v1199_v57 }
 0x2b7   : > { %v997_v12 = vpop.f32.mrf.mxu2  ;;  %v1123_v55 = vpop.f32.mrf.mxu3 }
 0x2b8   : > { %v3407_v58 = vadd.f32 %v2390_v35, %v997_v12  ;;  %v3409_v13 = vadd.f32 %v2405_v36, %v1123_v55  ;;  %v1187_v14 = vpop.f32.mrf.mxu1 }
 0x2b9   : > { %v3417_v19 = vadd.f32 %v2413_v15, %v1187_v14 }
 0x2ba   : > { %v1202_v16 = vsel %vm1192_vm3, %v3407_v58, -inf  ;;  %v1223_v18 = vsel %vm1192_vm3, %v3409_v13, -inf }
 0x2bb   : > { %1203 = vmax.xlane.f32.xlu0 %v1202_v16  ;;  %1209 = vmax.xlane.f32.xlu2 %v1208_v17  ;;  %v1235_v26 = vsel %vm1192_vm3, %v3417_v19, -inf }
 0x2bc   : > { %1224 = vmax.xlane.f32.xlu1 %v1223_v18 }
 0x2bf   : > { %v1091_v22 = vpop.f32.mrf.mxu2  ;;  %v1125_v40 = vpop.f32.mrf.mxu3 }
 0x2c0   : > { %v1189_v23 = vpop.f32.mrf.mxu1  ;;  %v3428_v30 = vadd.f32 %v2401_v25, %v1091_v22  ;;  %v3436_v43 = vadd.f32 %v2406_v37, %v1125_v40  ;;  %v3442_v49 = vpop.xlane.xlu1 %1194 }
 0x2c1   : > { %v3422_v24 = vadd.f32 %v2414_v21, %v1189_v23 }
 0x2c2   : > { %v1217_v39 = vsel %vm1192_vm3, %v3428_v30, -inf  ;;  %v1226_v45 = vsel %vm1192_vm3, %v3436_v43, -inf }
 0x2c3   : > { %1236 = vmax.xlane.f32.xlu2 %v1235_v26  ;;  %v1238_v27 = vsel %vm1192_vm3, %v3422_v24, -inf }
 0x2c4   : > { %1239 = vmax.xlane.f32.xlu0 %v1238_v27 }
 0x2c7   : > { %v1093_v31 = vpop.f32.mrf.mxu2  ;;  %v3440_v47 = vpop.xlane.xlu2 %1197 }
 0x2c8   : > { %v3430_v33 = vadd.f32 %v2402_v29, %v1093_v31 }
 0x2ca   : > { %v1220_v41 = vsel %vm1192_vm3, %v3430_v33, -inf }
 0x2cb   : > { %1218 = vmax.xlane.f32.xlu2 %v1217_v39 }
 0x2cc   : > { %1221 = vmax.xlane.f32.xlu0 %v1220_v41 }
 0x2d3   : > { %1227 = vmax.xlane.f32.xlu2 %v1226_v45 }
 0x307   : > { %v1213_v50 = vpop.xlane.xlu2 %1212 }
 0x308   : > { %v1247_v51 = vsub.f32 %v3369_v42, %v1213_v50 }
 0x30a   : > { %v1269_v52 = vmul.f32 1.442695, %v1247_v51 }
 0x30c   : > { %2545 = vpow2.f32 %v1269_v52  ;;  %v1241_v52 = vsub.f32 %v3355_v28, %v3442_v49 }
 0x30d   : > { %v1207_v54 = vpop.xlane.xlu1 %1206 }
 0x30e   : > { %v1245_v59 = vsub.f32 %v3373_v48, %v1207_v54 }
 0x310   : > { %v1265_v60 = vmul.f32 1.442695, %v1245_v59 }
 0x312   : > { %v3446_v61 = vpop.eup %2545  ;;  %2547 = vpow2.f32 %v1265_v60  ;;  %v1257_v60 = vmul.f32 1.442695, %v1241_v52 }
 0x313   : > { %v1307_v63 = vsel %vm1192_vm3, %v3446_v61, 0.0 }
 0x314   : > { %1308 = vadd.xlane.f32.xlu0 %v1307_v63 }
 0x318   : > { %v3450_v0 = vpop.eup %2547  ;;  %v1231_v3 = vpop.xlane.xlu0 %1230 }
 0x319   : > { %v1253_v5 = vsub.f32 %v3380_v53, %v1231_v3  ;;  %v1301_v42 = vsel %vm1192_vm3, %v3450_v0, 0.0 }
 0x31a   : > { %1302 = vadd.xlane.f32.xlu1 %v1301_v42 }
 0x31b   : > { %v1281_v6 = vmul.f32 1.442695, %v1253_v5 }
 0x31d   : > { %2549 = vpow2.f32 %v1281_v6 }
 0x320   : > { %v1216_v48 = vpop.xlane.xlu0 %1215  ;;  %v1234_v57 = vpop.xlane.xlu1 %1233 }
 0x321   : > { %v1248_v7 = vsub.f32 %v3384_v62, %v1216_v48  ;;  %v1254_v36 = vsub.f32 %v3389_v2, %v1234_v57 }
 0x323   : > { %v3456_v8 = vpop.eup %2549  ;;  %v1271_v10 = vmul.f32 1.442695, %v1248_v7  ;;  %v1283_v56 = vmul.f32 1.442695, %v1254_v36 }
 0x324   : > { %v1325_v11 = vsel %vm1192_vm3, %v3456_v8, 0.0 }
 0x325   : > { %2551 = vpow2.f32 %v1271_v10  ;;  %1326 = vadd.xlane.f32.xlu2 %v1325_v11 }
 0x326   : > { %v1201_v35 = vpop.xlane.xlu2 %1200 }
 0x327   : > { %v1243_v53 = vsub.f32 %v3395_v9, %v1201_v35 }
 0x329   : > { %v1261_v12 = vmul.f32 1.442695, %v1243_v53 }
 0x32b   : > { %v3462_v55 = vpop.eup %2551  ;;  %2553 = vpow2.f32 %v1261_v12 }
 0x32c   : > { %v1310_v62 = vsel %vm1192_vm3, %v3462_v55, 0.0  ;;  %2555 = vpow2.f32 %v1283_v56 }
 0x32d   : > { %1311 = vadd.xlane.f32.xlu1 %v1310_v62 }
 0x32e   : > { %v1204_v14 = vpop.xlane.xlu0 %1203  ;;  %v1210_v15 = vpop.xlane.xlu2 %1209 }
 0x32f   : > { %v1244_v16 = vsub.f32 %v3407_v58, %v1204_v14  ;;  %v1246_v17 = vsub.f32 %v3402_v38, %v1210_v15  ;;  %v1225_v18 = vpop.xlane.xlu1 %1224 }
 0x330   : > { %v1251_v20 = vsub.f32 %v3409_v13, %v1225_v18 }
 0x331   : > { %v3468_v21 = vpop.eup %2553  ;;  %v1263_v2 = vmul.f32 1.442695, %v1244_v16  ;;  %v1267_v9 = vmul.f32 1.442695, %v1246_v17 }
 0x332   : > { %v1295_v22 = vsel %vm1192_vm3, %v3468_v21, 0.0  ;;  %v1277_v23 = vmul.f32 1.442695, %v1251_v20  ;;  %v3473_v26 = vpop.eup %2555 }
 0x333   : > { %2557 = vpow2.f32 %v1263_v2  ;;  %1296 = vadd.xlane.f32.xlu0 %v1295_v22  ;;  %v1328_v31 = vsel %vm1192_vm3, %v3473_v26, 0.0 }
 0x334   : > { %2559 = vpow2.f32 %v1267_v9 }
 0x335   : > { %2561 = vpow2.f32 %v1277_v23 }
 0x336   : > { %v1237_v25 = vpop.xlane.xlu2 %1236 }
 0x337   : > { %v1255_v38 = vsub.f32 %v3417_v19, %v1237_v25  ;;  %v1240_v50 = vpop.xlane.xlu0 %1239 }
 0x338   : > { %v1256_v51 = vsub.f32 %v3422_v24, %v1240_v50 }
 0x339   : > { %v3476_v58 = vpop.eup %2557  ;;  %v1285_v27 = vmul.f32 1.442695, %v1255_v38 }
 0x33a   : > { %v3478_v29 = vpop.eup %2559  ;;  %v1298_v13 = vsel %vm1192_vm3, %v3476_v58, 0.0  ;;  %v1287_v54 = vmul.f32 1.442695, %v1256_v51 }
 0x33b   : > { %2563 = vpow2.f32 %v1285_v27  ;;  %v1304_v37 = vsel %vm1192_vm3, %v3478_v29, 0.0  ;;  %1299 = vadd.xlane.f32.xlu1 %v1298_v13  ;;  %1329 = vadd.xlane.f32.xlu0 %v1328_v31  ;;  %v3486_v19 = vpop.eup %2561 }
 0x33c   : > { %1305 = vadd.xlane.f32.xlu2 %v1304_v37  ;;  %v1319_v41 = vsel %vm1192_vm3, %v3486_v19, 0.0  ;;  %2565 = vpow2.f32 %v1287_v54 }
 0x33d   : > { %2567 = vpow2.f32 %v1257_v60 }
 0x33e   : > { %v3500_v45 = vpop.xlane.xlu2 %1218 }
 0x33f   : > { %v1222_v63 = vpop.xlane.xlu0 %1221  ;;  %v1249_v25 = vsub.f32 %v3428_v30, %v3500_v45 }
 0x340   : > { %v1250_v3 = vsub.f32 %v3430_v33, %v1222_v63 }
 0x341   : > { %v3488_v39 = vpop.eup %2563 }
 0x342   : > { %v1331_v40 = vsel %vm1192_vm3, %v3488_v39, 0.0  ;;  %v3509_v42 = vpop.eup %2565  ;;  %v1275_v24 = vmul.f32 1.442695, %v1250_v3 }
 0x343   : > { %1332 = vadd.xlane.f32.xlu1 %v1331_v40  ;;  %1320 = vadd.xlane.f32.xlu0 %v1319_v41  ;;  %v1334_v28 = vsel %vm1192_vm3, %v3509_v42, 0.0  ;;  %v3513_v49 = vpop.eup %2567  ;;  %v1273_v41 = vmul.f32 1.442695, %v1249_v25 }
 0x346   : > { %v1228_v59 = vpop.xlane.xlu2 %1227 }
 0x354   : > { %1540 = vrot.lane.b32.xlu2 %v3312_v4, %s2905_s6  ;;  %v1242_v4 = vsub.f32 %v3359_v32, %v3440_v47  ;;  %v1289_v32 = vsel %vm1192_vm3, %v3513_v49, 0.0 }
 0x357   : > { %1515 = vrot.lane.b32.xlu0 %v3304_v46, %s2905_s6  ;;  %v1252_v46 = vsub.f32 %v3436_v43, %v1228_v59 }
 0x359   : > { %v1279_v5 = vmul.f32 1.442695, %v1252_v46 }
 0x35c   : > { %1565 = vrot.lane.b32.xlu1 %v3310_v1, %s2905_s6  ;;  %v1259_v1 = vmul.f32 1.442695, %v1242_v4 }
 0x35e   : > { %2569 = vpow2.f32 %v1259_v1 }
 0x35f   : > { %2571 = vpow2.f32 %v1279_v5 }
 0x360   : > { %2573 = vpow2.f32 %v1275_v24 }
 0x364   : > { %v3517_v43 = vpop.eup %2569 }
 0x365   : > { %v3519_v33 = vpop.eup %2571  ;;  %v1292_v47 = vsel %vm1192_vm3, %v3517_v43, 0.0 }
 0x366   : > { %v3523_v6 = vpop.eup %2573  ;;  %v1322_v48 = vsel %vm1192_vm3, %v3519_v33, 0.0 }
 0x367   : > { %v1316_v7 = vsel %vm1192_vm3, %v3523_v6, 0.0 }
 0x37d   : > { %1335 = vadd.xlane.f32.xlu2 %v1334_v28 }
 0x381   : > { %1290 = vadd.xlane.f32.xlu0 %v1289_v32 }
 0x385   : > { %1293 = vadd.xlane.f32.xlu2 %v1292_v47 }
 0x386   : > { %1323 = vadd.xlane.f32.xlu1 %v1322_v48 }
 0x387   : > { %v1309_v10 = vpop.xlane.xlu0 %1308 }
 0x388   : > { %2575 = vrcp.f32 %v1309_v10 }
 0x389   : > { %1317 = vadd.xlane.f32.xlu0 %v1316_v7 }
 0x38d   : > { %v1303_v11 = vpop.xlane.xlu1 %1302 }
 0x38e   : > { %v2576_v35 = vpop.eup %2575 }
 0x38f   : > { %v1359_v53 = vmul.f32 %v2576_v35, %v3446_v61 }
 0x391   : > { %v1375_v62 = vpack.c.bf16 %v1359_v53, %v1359_v53 }
 0x393   : > { %v1462_v16 = vunpack.c.l.b16 %v1375_v62 }
 0x398   : > { %v1327_v12 = vpop.xlane.xlu2 %1326 }
 0x39d   : > { %1490 = vrot.lane.b32.xlu2 %v3256_v34, %s2905_s6 }
 0x39f   : > { %1390 = vrot.lane.b32.xlu1 %v3272_v44, %s2905_s6  ;;  %s2906_s6 = smov 16  }
 0x3a0   : > { %v1312_v57 = vpop.xlane.xlu1 %1311 }
 0x3a1   : > { %2577 = vrcp.f32 %v1312_v57 }
 0x3a2   : > { %2579 = vrcp.f32 %v1303_v11 }
 0x3a6   : > { %v1297_v14 = vpop.xlane.xlu0 %1296 }
 0x3a7   : > { %v2578_v36 = vpop.eup %2577  ;;  %2581 = vrcp.f32 %v1297_v14 }
 0x3a8   : > { %v1360_v56 = vmul.f32 %v2578_v36, %v3462_v55  ;;  %v2580_v44 = vpop.eup %2579 }
 0x3a9   : > { %v1357_v61 = vmul.f32 %v2580_v44, %v3450_v0 }
 0x3aa   : > { %v1376_v15 = vpack.c.bf16 %v1360_v56, %v1360_v56 }
 0x3ab   : > { %v1373_v38 = vpack.c.bf16 %v1357_v61, %v1357_v61 }
 0x3ac   : > { %v1463_v17 = vunpack.c.l.b16 %v1376_v15 }
 0x3ad   : > { %v2582_v9 = vpop.eup %2581 }
 0x3ae   : > { %v1464_v34 = vpack.c.b16 %v1463_v17, %v1462_v16  ;;  %v1300_v18 = vpop.xlane.xlu1 %1299  ;;  %v1355_v20 = vmul.f32 %v2582_v9, %v3468_v21  ;;  %v1330_v55 = vpop.xlane.xlu0 %1329  ;;  %v1437_v21 = vunpack.c.l.b16 %v1373_v38 }
 0x3af   : > { %v1306_v2 = vpop.xlane.xlu2 %1305 }
 0x3b0   : > { %2583 = vrcp.f32 %v1306_v2  ;;  %2322 = vmatmul.msk.bf16.vlgmr.msra.gmra.mxu1 %vm1192_vm3, %v1464_v34  ;;  %v1371_v31 = vpack.c.bf16 %v1355_v20, %v1355_v20 }
 0x3b1   : > { %2585 = vrcp.f32 %v1300_v18 }
 0x3b2   : > { %2587 = vrcp.f32 %v1330_v55  ;;  %v1412_v51 = vunpack.c.l.b16 %v1371_v31 }
 0x3b3   : > { %2589 = vrcp.f32 %v1327_v12 }
 0x3b4   : > { %2591 = vpow2.f32 %v1273_v41 }
 0x3b6   : > { %v2584_v22 = vpop.eup %2583  ;;  %v1321_v45 = vpop.xlane.xlu0 %1320 }
 0x3b7   : > { %v2586_v23 = vpop.eup %2585  ;;  %v1358_v27 = vmul.f32 %v2584_v22, %v3478_v29  ;;  %v1541_v13 = vpop.permute.xlu2 %1540 }
 0x3b8   : > { %v1356_v37 = vmul.f32 %v2586_v23, %v3476_v58  ;;  %1553 = vmatpush.bf16.msrb.mxu0 %v1541_v13  ;;  %v2588_v59 = vpop.eup %2587  ;;  %v1333_v46 = vpop.xlane.xlu1 %1332 }
 0x3b9   : > { %v1374_v40 = vpack.c.bf16 %v1358_v27, %v1358_v27  ;;  %v2590_v29 = vpop.eup %2589  ;;  %v1366_v58 = vmul.f32 %v2588_v59, %v3473_v26  ;;  %2593 = vrcp.f32 %v1333_v46 }
 0x3ba   : > { %v1372_v0 = vpack.c.bf16 %v1356_v37, %v1356_v37  ;;  %v1365_v60 = vmul.f32 %v2590_v29, %v3456_v8  ;;  %v3546_v4 = vpop.eup %2591 }
 0x3bb   : > { %v1438_v50 = vunpack.c.l.b16 %v1374_v40  ;;  %v1382_v63 = vpack.c.bf16 %v1366_v58, %v1366_v58  ;;  %v1313_v3 = vsel %vm1192_vm3, %v3546_v4, 0.0 }
 0x3bc   : > { %v1413_v52 = vunpack.c.l.b16 %v1372_v0  ;;  %v1381_v1 = vpack.c.bf16 %v1365_v60, %v1365_v60 }
 0x3bd   : > { %v1439_v54 = vpack.c.b16 %v1438_v50, %v1437_v21  ;;  %v1538_v5 = vunpack.c.l.b16 %v1382_v63 }
 0x3be   : > { %v1414_v30 = vpack.c.b16 %v1413_v52, %v1412_v51  ;;  %v1537_v28 = vunpack.c.l.b16 %v1381_v1 }
 0x3bf   : > { %2321 = vmatmul.msk.bf16.vlgmr.msra.gmra.mxu0 %vm1192_vm3, %v1439_v54  ;;  %v2594_v26 = vpop.eup %2593 }
 0x3c0   : > { %2320 = vmatmul.msk.bf16.vlgmr.msra.gmra.mxu3 %vm1192_vm3, %v1414_v30  ;;  %v1539_v32 = vpack.c.b16 %v1538_v5, %v1537_v28  ;;  %v1367_v48 = vmul.f32 %v2594_v26, %v3488_v39 }
 0x3c2   : > { %v1383_v10 = vpack.c.bf16 %v1367_v48, %v1367_v48 }
 0x3c4   : > { %v1562_v12 = vunpack.c.l.b16 %v1383_v10 }
 0x3c9   : > { %1314 = vadd.xlane.f32.xlu1 %v1313_v3  ;;  %v1516_v24 = vpop.permute.xlu0 %1515 }
 0x3ca   : > { %1528 = vmatpush.bf16.msrb.mxu3 %v1516_v24 }
 0x3ce   : > { %v1566_v47 = vpop.permute.xlu1 %1565 }
 0x3cf   : > { %2325 = vmatmul.msk.bf16.vlgmr.msrb.gmra.mxu0 %vm1192_vm3, %v1539_v32  ;;  %1578 = vmatpush.bf16.msrb.mxu1 %v1566_v47  ;;  %v2376_v32 = vld [vmem:[%s3768_s0 + $0x8] sm:$0xff] }
 0x3d0   : > { %v2375_v47 = vld [vmem:[%s3769_s23] sm:$0xff]  ;;  %s3778_s23 = scalar_lea.vmem [#allocation11], %s3169_s14  ;;  %s2910_s14 = smov [#allocation13]  }
 0x3f0   : > { %v1336_v8 = vpop.xlane.xlu2 %1335 }
 0x3f1   : > { %2595 = vrcp.f32 %v1336_v8 }
 0x3f2   : > { %2597 = vrcp.f32 %v1321_v45 }
 0x3f4   : > { %v1291_v14 = vpop.xlane.xlu0 %1290 }
 0x3f7   : > { %v2596_v7 = vpop.eup %2595 }
 0x3f8   : > { %v1368_v11 = vmul.f32 %v2596_v7, %v3509_v42  ;;  %v2598_v35 = vpop.eup %2597  ;;  %v1294_v36 = vpop.xlane.xlu2 %1293 }
 0x3f9   : > { %v1324_v57 = vpop.xlane.xlu1 %1323  ;;  %v1363_v56 = vmul.f32 %v2598_v35, %v3486_v19 }
 0x3fa   : > { %v1384_v53 = vpack.c.bf16 %v1368_v11, %v1368_v11  ;;  %2599 = vrcp.f32 %v1324_v57 }
 0x3fb   : > { %2601 = vrcp.f32 %v1294_v36  ;;  %v1379_v39 = vpack.c.bf16 %v1363_v56, %v1363_v56 }
 0x3fc   : > { %v1563_v62 = vunpack.c.l.b16 %v1384_v53  ;;  %2603 = vrcp.f32 %v1291_v14  ;;  %v1318_v27 = vpop.xlane.xlu0 %1317 }
 0x3fd   : > { %v1512_v18 = vunpack.c.l.b16 %v1379_v39  ;;  %2605 = vrcp.f32 %v1318_v27 }
 0x3fe   : > { %v1564_v15 = vpack.c.b16 %v1563_v62, %v1562_v12 }
 0x400   : > { %v2600_v16 = vpop.eup %2599  ;;  %2326 = vmatmul.msk.bf16.vlgmr.msrb.gmra.mxu1 %vm1192_vm3, %v1564_v15  ;;  %v1491_v38 = vpop.permute.xlu2 %1490 }
 0x401   : > { %v1364_v17 = vmul.f32 %v2600_v16, %v3519_v33  ;;  %v2602_v34 = vpop.eup %2601 }
 0x402   : > { %v2604_v44 = vpop.eup %2603  ;;  %v1354_v9 = vmul.f32 %v2602_v34, %v3517_v43 }
 0x403   : > { %v1380_v42 = vpack.c.bf16 %v1364_v17, %v1364_v17  ;;  %v1353_v19 = vmul.f32 %v2604_v44, %v3513_v49  ;;  %v2606_v31 = vpop.eup %2605 }
 0x404   : > { %v1370_v20 = vpack.c.bf16 %v1354_v9, %v1354_v9  ;;  %v1362_v49 = vmul.f32 %v2606_v31, %v3523_v6  ;;  %v2538_v31 = vld [vmem:[%s3770_s3] ss:$0 sm:$0xff]  ;;  %s2074_s3 = sshll.u32 %s3779_s25, 4  ;;  %s2075_s3 = int_to_ptr.hbm [resolvable:$true] %s2074_s3 }
 0x405   : > { %v1513_v2 = vunpack.c.l.b16 %v1380_v42  ;;  %v1369_v55 = vpack.c.bf16 %v1353_v19, %v1353_v19 }
 0x406   : > { %v1388_v22 = vunpack.c.l.b16 %v1370_v20  ;;  %v1378_v0 = vpack.c.bf16 %v1362_v49, %v1362_v49 }
 0x407   : > { %v1514_v61 = vpack.c.b16 %v1513_v2, %v1512_v18  ;;  %v1387_v23 = vunpack.c.l.b16 %v1369_v55 }
 0x408   : > { %v1488_v54 = vunpack.c.l.b16 %v1378_v0 }
 0x409   : > { %2324 = vmatmul.msk.bf16.vlgmr.msrb.gmra.mxu3 %vm1192_vm3, %v1514_v61  ;;  %v1389_v33 = vpack.c.b16 %v1388_v22, %v1387_v23 }
 0x411   : > { %v1391_v25 = vpop.permute.xlu1 %1390 }
 0x412   : > { %1403 = vmatpush.bf16.msra.mxu2 %v1391_v25 }
 0x415   : > { %2319 = vmatmul.msk.bf16.vlgmr.msra.gmra.mxu2 %vm1192_vm3, %v1389_v33 }
 0x416   : > { %1503 = vmatpush.bf16.msrb.mxu2 %v1491_v38 }
 0x41a   : > { %1680 = vmatpush.bf16.msra.mxu2 %v2376_v32 }
 0x41e   : > { %1681 = vmatpush.bf16.msra.mxu2 %v2375_v47 }
 0x42d   : > { %v1480_v52 = vpop.f32.mrf.mxu1 }
 0x435   : > { %v1482_v45 = vpop.f32.mrf.mxu1 }
 0x436   : > { %v2517_v60 = vpack.i.bf16 %v1482_v45, %v1480_v52 }
 0x43c   : > { %v1455_v13 = vpop.f32.mrf.mxu0  ;;  %v1315_v43 = vpop.xlane.xlu1 %1314 }
 0x43d   : > { %2607 = vrcp.f32 %v1315_v43 }
 0x443   : > { %v2608_v37 = vpop.eup %2607  ;;  %v1430_v40 = vpop.f32.mrf.mxu3 }
 0x444   : > { %v1361_v41 = vmul.f32 %v2608_v37, %v3546_v4  ;;  %v1457_v21 = vpop.f32.mrf.mxu0 }
 0x445   : > { %v2507_v50 = vpack.i.bf16 %v1457_v21, %v1455_v13 }
 0x446   : > { %v1377_v51 = vpack.c.bf16 %v1361_v41, %v1361_v41 }
 0x447   : > { %2508 = vrot.lane.b32.xlu1 %v2507_v50, %s2906_s6 }
 0x448   : > { %v1487_v59 = vunpack.c.l.b16 %v1377_v51  ;;  %v2636_v51 = vld [vmem:[#allocation13 + $0x8] sm:$0xff] }
 0x44a   : > { %v1489_v30 = vpack.c.b16 %v1488_v54, %v1487_v59 }
 0x44b   : > { %v1432_v29 = vpop.f32.mrf.mxu3 }
 0x44c   : > { %v2512_v58 = vpack.i.bf16 %v1432_v29, %v1430_v40  ;;  %2323 = vmatmul.msk.bf16.vlgmr.msrb.gmra.mxu2 %vm1192_vm3, %v1489_v30  ;;  %v1555_v6 = vpop.f32.mrf.mxu0  ;;  %v2635_v40 = vld [vmem:[#allocation13] sm:$0xff]  ;;  %v2637_v29 = vld [vmem:[#allocation13 + $0x10] sm:$0xff] }
 0x44e   : > { %2513 = vrot.lane.b32.xlu0 %v2512_v58, %s2907_s15 }
 0x454   : > { %v1557_v4 = vpop.f32.mrf.mxu0 }
 0x455   : > { %v2522_v63 = vpack.i.bf16 %v1557_v4, %v1555_v6  ;;  %v2638_v4 = vld [vmem:[#allocation13 + $0x18] sm:$0xff] }
 0x456   : > { %2518 = vrot.lane.b32.xlu0 %v2517_v60, %s2908_s1 }
 0x45e   : > { %2523 = vrot.lane.b32.xlu0 %v2522_v63, %s2906_s6 }
 0x47d   : > { %v1580_v1 = vpop.f32.mrf.mxu1 }
 0x485   : > { %v1582_v24 = vpop.f32.mrf.mxu1 }
 0x486   : > { %v2532_v28 = vpack.i.bf16 %v1582_v24, %v1580_v1  ;;  %v2909_v1 = vmov 32.0  }
 0x487   : > { %2609 = vrcp.f32 %v2909_v1 }
 0x48c   : > { %v1530_v46 = vpop.f32.mrf.mxu3 }
 0x494   : > { %v1532_v3 = vpop.f32.mrf.mxu3 }
 0x495   : > { %v2527_v5 = vpack.i.bf16 %v1532_v3, %v1530_v46  ;;  %v2610_v3 = vpop.eup %2609 }
 0x496   : > { %vm1716_vm5 = vweird.f32 %v2610_v3 }
 0x497   : > { %2528 = vrot.lane.b32.xlu2 %v2527_v5, %s2907_s15  ;;  %v1712_v5 = vmul.f32 32.0, %v2610_v3 }
 0x498   : > { %v1405_v8 = vpop.f32.mrf.mxu2 }
 0x499   : > { %v1713_v24 = vsub.f32 1.0, %v1712_v5 }
 0x49f   : > { %2533 = vrot.lane.b32.xlu2 %v2532_v28, %s2908_s1  ;;  %v1714_v28 = vmul.f32 %v2610_v3, %v1713_v24 }
 0x4a0   : > { %v1407_v11 = vpop.f32.mrf.mxu2 }
 0x4a1   : > { %v1715_v32 = vadd.f32 %v2610_v3, %v1714_v28 }
 0x4a3   : > { %v3592_v47 = vsel %vm1716_vm5, %v2610_v3, %v1715_v32 }
 0x4b9   : > { %v2509_v10 = vpop.permute.xlu1 %2508 }
 0x4ba   : > { %v2511_v53 = vunpack.i.h.bf16 %v2509_v10  ;;  %v2510_v36 = vunpack.i.l.bf16 %v2509_v10 }
 0x4c0   : > { %v2514_v26 = vpop.permute.xlu0 %2513 }
 0x4c1   : > { %v2516_v48 = vunpack.i.h.bf16 %v2514_v26  ;;  %v2515_v7 = vunpack.i.l.bf16 %v2514_v26 }
 0x4c3   : > { %v1609_v57 = vsel %vm947_vm2, %v1405_v8, %v2515_v7  ;;  %v1610_v35 = vsel %vm947_vm2, %v1407_v11, %v2516_v48 }
 0x4c4   : > { %v1611_v14 = vsel %vm1192_vm3, %v1609_v57, %v2510_v36  ;;  %v1612_v15 = vsel %vm1192_vm3, %v1610_v35, %v2511_v53 }
 0x4c8   : > { %v2519_v12 = vpop.permute.xlu0 %2518 }
 0x4c9   : > { %v2521_v62 = vunpack.i.h.bf16 %v2519_v12  ;;  %v2520_v56 = vunpack.i.l.bf16 %v2519_v12 }
 0x4cb   : > { %v1614_v16 = vsel %vm1613_vm4, %v1611_v14, %v2520_v56  ;;  %v1615_v39 = vsel %vm1613_vm4, %v1612_v15, %v2521_v62 }
 0x4cc   : > { %v1646_v17 = vpack.c.bf16 %v1615_v39, %v1614_v16 }
 0x4ce   : > { %2335 = vmatmul.msk.bf16.vlgmr.msra.gmra.mxu2 %vm789_vm1, %v1646_v17 }
 0x4cf   : > { %v1505_v42 = vpop.f32.mrf.mxu2 }
 0x4d0   : > { %v2524_v44 = vpop.permute.xlu0 %2523 }
 0x4d1   : > { %v2526_v20 = vunpack.i.h.bf16 %v2524_v44  ;;  %v2525_v55 = vunpack.i.l.bf16 %v2524_v44 }
 0x4d7   : > { %v1507_v9 = vpop.f32.mrf.mxu2 }
 0x4f1   : > { %v2529_v34 = vpop.permute.xlu2 %2528 }
 0x4f2   : > { %v2531_v18 = vunpack.i.h.bf16 %v2529_v34  ;;  %v2530_v2 = vunpack.i.l.bf16 %v2529_v34 }
 0x4f4   : > { %v1640_v61 = vsel %vm947_vm2, %v1505_v42, %v2530_v2  ;;  %v1641_v19 = vsel %vm947_vm2, %v1507_v9, %v2531_v18  ;;  %v2378_v18 = vld [vmem:[%s3771_s21 + $0x8] sm:$0xff]  ;;  %s2911_s21 = smov 128  }
 0x4f5   : > { %v1642_v38 = vsel %vm1192_vm3, %v1640_v61, %v2525_v55  ;;  %v1643_v33 = vsel %vm1192_vm3, %v1641_v19, %v2526_v20  ;;  %1842 = vmatpush.bf16.msra.mxu3 %v2378_v18  ;;  %v2377_v9 = vld [vmem:[%s3772_s9] sm:$0xff]  ;;  %vm1929_vm3 = vcmask 523264  }
 0x4f9   : > { %v2534_v22 = vpop.permute.xlu2 %2533  ;;  %1843 = vmatpush.bf16.msra.mxu3 %v2377_v9 }
 0x4fa   : > { %v2536_v23 = vunpack.i.h.bf16 %v2534_v22  ;;  %v2535_v25 = vunpack.i.l.bf16 %v2534_v22 }
 0x4fc   : > { %v1644_v27 = vsel %vm1613_vm4, %v1642_v38, %v2535_v25  ;;  %v1645_v13 = vsel %vm1613_vm4, %v1643_v33, %v2536_v23 }
 0x4fd   : > { %v1647_v43 = vpack.c.bf16 %v1645_v13, %v1644_v27 }
 0x4ff   : > { %2336 = vmatmul.msk.bf16.gmra.mxu2 %vm789_vm1, %v1647_v43 }
 0x551   : > { %v1683_v49 = vpop.f32.mrf.mxu2 }
 0x552   : > { %v1684_v37 = vadd.f32 %v2538_v31, %v1683_v49 }
 0x554   : > { %v1693_v0 = vadd.f32 %v2635_v40, %v1684_v37 }
 0x556   : > { %v1699_v41 = vsel %vm789_vm1, %v1693_v0, 0.0 }
 0x557   : > { %1700 = vadd.xlane.f32.xlu1 %v1699_v41 }
 0x559   : > { %v1685_v21 = vpop.f32.mrf.mxu2 }
 0x55a   : > { %v1686_v50 = vadd.f32 %v2538_v31, %v1685_v21 }
 0x55c   : > { %v1694_v52 = vadd.f32 %v2636_v51, %v1686_v50  ;;  %v2540_v51 = vld [vmem:[%s3774_s10] ss:$0 sm:$0xff] }
 0x55e   : > { %v1702_v54 = vsel %vm789_vm1, %v1694_v52, 0.0 }
 0x55f   : > { %1703 = vadd.xlane.f32.xlu0 %v1702_v54 }
 0x582   : > { %v1688_v59 = vpop.f32.mrf.mxu2 }
 0x583   : > { %v1689_v30 = vadd.f32 %v2538_v31, %v1688_v59 }
 0x585   : > { %v1695_v58 = vadd.f32 %v2637_v29, %v1689_v30 }
 0x587   : > { %v1705_v6 = vsel %vm789_vm1, %v1695_v58, 0.0 }
 0x588   : > { %1706 = vadd.xlane.f32.xlu2 %v1705_v6 }
 0x58a   : > { %v1690_v45 = vpop.f32.mrf.mxu2 }
 0x58b   : > { %v1691_v60 = vadd.f32 %v2538_v31, %v1690_v45 }
 0x58d   : > { %v1696_v63 = vadd.f32 %v2638_v4, %v1691_v60 }
 0x58f   : > { %v1708_v46 = vsel %vm789_vm1, %v1696_v63, 0.0 }
 0x590   : > { %1709 = vadd.xlane.f32.xlu1 %v1708_v46 }
 0x5ca   : > { %v1701_v8 = vpop.xlane.xlu1 %1700 }
 0x5cb   : > { %v1718_v26 = vmul.f32 %v3592_v47, %v1701_v8 }
 0x5cd   : > { %v1722_v48 = vsub.f32 %v1693_v0, %v1718_v26  ;;  %v2539_v0 = vld [vmem:[%s734_s22] ss:$0 sm:$0xff] }
 0x5cf   : > { %v1726_v7 = vmul.f32 %v1722_v48, %v1722_v48 }
 0x5d1   : > { %v1730_v10 = vsel %vm789_vm1, %v1726_v7, 0.0 }
 0x5d2   : > { %v1704_v11 = vpop.xlane.xlu0 %1703  ;;  %1731 = vadd.xlane.f32.xlu0 %v1730_v10 }
 0x5d3   : > { %v1719_v57 = vmul.f32 %v3592_v47, %v1704_v11 }
 0x5d5   : > { %v1723_v35 = vsub.f32 %v1694_v52, %v1719_v57 }
 0x5d7   : > { %v1727_v53 = vmul.f32 %v1723_v35, %v1723_v35 }
 0x5d9   : > { %v1733_v36 = vsel %vm789_vm1, %v1727_v53, 0.0 }
 0x5da   : > { %1734 = vadd.xlane.f32.xlu2 %v1733_v36 }
 0x5fb   : > { %v1707_v12 = vpop.xlane.xlu2 %1706 }
 0x5fc   : > { %v1720_v62 = vmul.f32 %v3592_v47, %v1707_v12 }
 0x5fe   : > { %v3599_v56 = vsub.f32 %v1695_v58, %v1720_v62 }
 0x600   : > { %v1728_v14 = vmul.f32 %v3599_v56, %v3599_v56 }
 0x602   : > { %v1736_v15 = vsel %vm789_vm1, %v1728_v14, 0.0 }
 0x603   : > { %1737 = vadd.xlane.f32.xlu1 %v1736_v15  ;;  %v1710_v16 = vpop.xlane.xlu1 %1709 }
 0x604   : > { %v1721_v39 = vmul.f32 %v3592_v47, %v1710_v16 }
 0x606   : > { %v3605_v17 = vsub.f32 %v1696_v63, %v1721_v39  ;;  %v2381_v39 = vld [vmem:[%s3219_s12 + $0x10] sm:$0xff] }
 0x608   : > { %v1729_v42 = vmul.f32 %v3605_v17, %v3605_v17 }
 0x60a   : > { %v1739_v34 = vsel %vm789_vm1, %v1729_v42, 0.0  ;;  %v2380_v42 = vld [vmem:[%s3219_s12 + $0x8] sm:$0xff] }
 0x60b   : > { %1740 = vadd.xlane.f32.xlu0 %v1739_v34  ;;  %v2379_v34 = vld [vmem:[%s3219_s12] sm:$0xff] }
 0x645   : > { %v1732_v2 = vpop.xlane.xlu0 %1731 }
 0x646   : > { %v1742_v44 = vmul.f32 %v1732_v2, %v3592_v47 }
 0x648   : > { %v1746_v61 = vadd.f32 1e-05, %v1742_v44 }
 0x64a   : > { %2611 = vrsqrt.f32 %v1746_v61  ;;  %vm1756_vm7 = vweird.f32 %v1746_v61 }
 0x64d   : > { %v1735_v19 = vpop.xlane.xlu2 %1734 }
 0x64e   : > { %v1743_v20 = vmul.f32 %v1735_v19, %v3592_v47 }
 0x650   : > { %v2612_v55 = vpop.eup %2611  ;;  %v1747_v22 = vadd.f32 1e-05, %v1743_v20 }
 0x651   : > { %v1751_v23 = vmul.f32 %v2612_v55, %v1746_v61  ;;  %vm1757_vm6 = vweird.f32 %v2612_v55 }
 0x652   : > { %2613 = vrsqrt.f32 %v1747_v22  ;;  %vm1758_vm8 = vmor %vm1756_vm7, %vm1757_vm6  ;;  %vm1766_vm10 = vweird.f32 %v1747_v22 }
 0x653   : > { %v1752_v25 = vmul.f32 %v2612_v55, %v1751_v23 }
 0x655   : > { %v1753_v38 = vmul.f32 0.5, %v1752_v25 }
 0x657   : > { %v1754_v33 = vsub.f32 1.5, %v1753_v38 }
 0x658   : > { %v2614_v27 = vpop.eup %2613 }
 0x659   : > { %v1755_v13 = vmul.f32 %v2612_v55, %v1754_v33  ;;  %v1761_v43 = vmul.f32 %v2614_v27, %v1747_v22  ;;  %vm1767_vm9 = vweird.f32 %v2614_v27 }
 0x65a   : > { %vm1768_vm11 = vmor %vm1766_vm10, %vm1767_vm9 }
 0x65b   : > { %v1762_v31 = vmul.f32 %v2614_v27, %v1761_v43  ;;  %v1759_v49 = vsel %vm1758_vm8, %v2612_v55, %v1755_v13 }
 0x65c   : > { %v1790_v41 = vmul.f32 %v1759_v49, %v1722_v48 }
 0x65d   : > { %v1763_v37 = vmul.f32 0.5, %v1762_v31 }
 0x65e   : > { %v1797_v52 = vmul.f32 %v2539_v0, %v1790_v41 }
 0x65f   : > { %v1764_v40 = vsub.f32 1.5, %v1763_v37 }
 0x660   : > { %v3623_v30 = vadd.f32 %v2540_v51, %v1797_v52 }
 0x661   : > { %v1765_v21 = vmul.f32 %v2614_v27, %v1764_v40 }
 0x663   : > { %v1769_v50 = vsel %vm1768_vm11, %v2614_v27, %v1765_v21 }
 0x664   : > { %v1791_v54 = vmul.f32 %v1769_v50, %v1723_v35 }
 0x666   : > { %v1798_v59 = vmul.f32 %v2539_v0, %v1791_v54 }
 0x668   : > { %v3625_v29 = vadd.f32 %v2540_v51, %v1798_v59 }
 0x66a   : > { %v1808_v58 = vpack.c.bf16 %v3625_v29, %v3623_v30 }
 0x66c   : > { %2345 = vmatmul.msk.bf16.vlgmr.msra.gmra.mxu3 %vm789_vm1, %v1808_v58 }
 0x676   : > { %v1738_v6 = vpop.xlane.xlu1 %1737 }
 0x677   : > { %v1744_v45 = vmul.f32 %v1738_v6, %v3592_v47 }
 0x679   : > { %v1748_v60 = vadd.f32 1e-05, %v1744_v45 }
 0x67b   : > { %2615 = vrsqrt.f32 %v1748_v60  ;;  %vm1776_vm13 = vweird.f32 %v1748_v60 }
 0x67e   : > { %v1741_v4 = vpop.xlane.xlu0 %1740 }
 0x67f   : > { %v1745_v63 = vmul.f32 %v1741_v4, %v3592_v47 }
 0x681   : > { %v2616_v46 = vpop.eup %2615  ;;  %v1749_v1 = vadd.f32 1e-05, %v1745_v63 }
 0x682   : > { %v1771_v3 = vmul.f32 %v2616_v46, %v1748_v60  ;;  %vm1777_vm12 = vweird.f32 %v2616_v46 }
 0x683   : > { %2617 = vrsqrt.f32 %v1749_v1  ;;  %vm1778_vm14 = vmor %vm1776_vm13, %vm1777_vm12  ;;  %vm1786_vm0 = vweird.f32 %v1749_v1 }
 0x684   : > { %v1772_v5 = vmul.f32 %v2616_v46, %v1771_v3 }
 0x686   : > { %v1773_v24 = vmul.f32 0.5, %v1772_v5 }
 0x688   : > { %v1774_v28 = vsub.f32 1.5, %v1773_v24 }
 0x689   : > { %v2618_v32 = vpop.eup %2617 }
 0x68a   : > { %v1775_v8 = vmul.f32 %v2616_v46, %v1774_v28  ;;  %v1781_v26 = vmul.f32 %v2618_v32, %v1749_v1  ;;  %vm1787_vm15 = vweird.f32 %v2618_v32 }
 0x68b   : > { %vm1788_vm2 = vmor %vm1786_vm0, %vm1787_vm15 }
 0x68c   : > { %v1782_v48 = vmul.f32 %v2618_v32, %v1781_v26  ;;  %v1779_v7 = vsel %vm1778_vm14, %v2616_v46, %v1775_v8 }
 0x68d   : > { %v1792_v57 = vmul.f32 %v1779_v7, %v3599_v56  ;;  %v2382_v56 = vld [vmem:[%s3219_s12 + $0x18] sm:$0xff] }
 0x68e   : > { %v1783_v10 = vmul.f32 0.5, %v1782_v48  ;;  %1940 = vmatpush.bf16.msra.mxu0 %v2382_v56 }
 0x68f   : > { %v1799_v12 = vmul.f32 %v2539_v0, %v1792_v57 }
 0x690   : > { %v1784_v11 = vsub.f32 1.5, %v1783_v10 }
 0x691   : > { %v3634_v14 = vadd.f32 %v2540_v51, %v1799_v12 }
 0x692   : > { %v1785_v35 = vmul.f32 %v2618_v32, %v1784_v11  ;;  %1941 = vmatpush.bf16.msra.mxu0 %v2381_v39  ;;  %v2542_v11 = vld [vmem:[%s745_s11] ss:$0 sm:$0xff] }
 0x694   : > { %v1789_v53 = vsel %vm1788_vm2, %v2618_v32, %v1785_v35 }
 0x695   : > { %v1793_v36 = vmul.f32 %v1789_v53, %v3605_v17  ;;  %v2541_v17 = vld [vmem:[%s737_s29] ss:$0 sm:$0xff] }
 0x696   : > { %1942 = vmatpush.bf16.msra.mxu0 %v2380_v42 }
 0x697   : > { %v1800_v62 = vmul.f32 %v2539_v0, %v1793_v36 }
 0x699   : > { %v3636_v15 = vadd.f32 %v2540_v51, %v1800_v62 }
 0x69a   : > { %1943 = vmatpush.bf16.msra.mxu0 %v2379_v34 }
 0x69b   : > { %v1809_v16 = vpack.c.bf16 %v3636_v15, %v3634_v14 }
 0x69d   : > { %2346 = vmatmul.msk.bf16.gmra.mxu3 %vm789_vm1, %v1809_v16 }
 0x6ef   : > { %v1845_v18 = vpop.f32.mrf.mxu3 }
 0x6f0   : > { %v1846_v2 = vadd.f32 %v2541_v17, %v1845_v18 }
 0x6f2   : > { %v1855_v44 = vmul.f32 %v1846_v2, %v1846_v2 }
 0x6f4   : > { %v1859_v9 = vmul.f32 %v1855_v44, %v1846_v2 }
 0x6f6   : > { %v1863_v61 = vmul.f32 0.044715, %v1859_v9 }
 0x6f7   : > { %v1847_v19 = vpop.f32.mrf.mxu3 }
 0x6f8   : > { %v1867_v20 = vadd.f32 %v1863_v61, %v1846_v2  ;;  %v1848_v55 = vadd.f32 %v2541_v17, %v1847_v19 }
 0x6fa   : > { %v1871_v22 = vmul.f32 0.7978846, %v1867_v20  ;;  %v1856_v23 = vmul.f32 %v1848_v55, %v1848_v55 }
 0x6fc   : > { %v1860_v25 = vmul.f32 %v1856_v23, %v1848_v55  ;;  %2619 = vtanh.f32 %v1871_v22 }
 0x6fe   : > { %v1864_v38 = vmul.f32 0.044715, %v1860_v25 }
 0x700   : > { %v1868_v33 = vadd.f32 %v1864_v38, %v1848_v55 }
 0x702   : > { %v1872_v27 = vmul.f32 0.7978846, %v1868_v33  ;;  %v2620_v13 = vpop.eup %2619 }
 0x703   : > { %v1879_v43 = vadd.f32 1.0, %v2620_v13 }
 0x704   : > { %2621 = vtanh.f32 %v1872_v27 }
 0x705   : > { %v1883_v49 = vmul.f32 0.5, %v1879_v43 }
 0x707   : > { %v1887_v0 = vmul.f32 %v1883_v49, %v1846_v2 }
 0x70a   : > { %v2622_v31 = vpop.eup %2621 }
 0x70b   : > { %v1880_v37 = vadd.f32 1.0, %v2622_v31 }
 0x70d   : > { %v1884_v40 = vmul.f32 0.5, %v1880_v37 }
 0x70f   : > { %v1888_v41 = vmul.f32 %v1884_v40, %v1848_v55 }
 0x711   : > { %v1891_v21 = vpack.c.bf16 %v1888_v41, %v1887_v0 }
 0x713   : > { %2363 = vmatmul.msk.bf16.vlgmr.msra.gmra.mxu0 %vm1929_vm3, %v1891_v21 }
 0x720   : > { %v1850_v50 = vpop.f32.mrf.mxu3 }
 0x721   : > { %v1851_v51 = vadd.f32 %v2541_v17, %v1850_v50 }
 0x723   : > { %v1857_v52 = vmul.f32 %v1851_v51, %v1851_v51 }
 0x725   : > { %v1861_v54 = vmul.f32 %v1857_v52, %v1851_v51 }
 0x727   : > { %v1865_v59 = vmul.f32 0.044715, %v1861_v54 }
 0x728   : > { %v1852_v58 = vpop.f32.mrf.mxu3 }
 0x729   : > { %v1869_v6 = vadd.f32 %v1865_v59, %v1851_v51  ;;  %v1853_v45 = vadd.f32 %v2541_v17, %v1852_v58 }
 0x72b   : > { %v1873_v60 = vmul.f32 0.7978846, %v1869_v6  ;;  %v1858_v4 = vmul.f32 %v1853_v45, %v1853_v45 }
 0x72d   : > { %v1862_v63 = vmul.f32 %v1858_v4, %v1853_v45  ;;  %2623 = vtanh.f32 %v1873_v60 }
 0x72f   : > { %v1866_v46 = vmul.f32 0.044715, %v1862_v63 }
 0x731   : > { %v1870_v1 = vadd.f32 %v1866_v46, %v1853_v45  ;;  %v2543_v46 = vld [vmem:[%s748_s7] ss:$0 sm:$0xff]  ;;  %s2072_s7 = sshll.u32 %s2910_s14, 4  ;;  %s2073_s7 = int_to_ptr.vmem [resolvable:$true] %s2072_s7 }
 0x733   : > { %v1874_v3 = vmul.f32 0.7978846, %v1870_v1  ;;  %v2624_v5 = vpop.eup %2623 }
 0x734   : > { %v1881_v24 = vadd.f32 1.0, %v2624_v5  ;;  %v2544_v5 = vld [vmem:[%s3778_s23] ss:$0 sm:$0xff] }
 0x735   : > { %2625 = vtanh.f32 %v1874_v3 }
 0x736   : > { %v1885_v8 = vmul.f32 0.5, %v1881_v24 }
 0x738   : > { %v1889_v48 = vmul.f32 %v1885_v8, %v1851_v51 }
 0x73b   : > { %v2626_v28 = vpop.eup %2625 }
 0x73c   : > { %v1882_v32 = vadd.f32 1.0, %v2626_v28 }
 0x73e   : > { %v1886_v26 = vmul.f32 0.5, %v1882_v32 }
 0x740   : > { %v1890_v7 = vmul.f32 %v1886_v26, %v1853_v45 }
 0x742   : > { %v1892_v10 = vpack.c.bf16 %v1890_v7, %v1889_v48 }
 0x744   : > { %2364 = vmatmul.msk.bf16.gmra.mxu0 %vm1929_vm3, %v1892_v10 }
 0x790   : > { %v1945_v57 = vpop.f32.mrf.mxu0 }
 0x791   : > { %v1946_v35 = vadd.f32 %v2542_v11, %v1945_v57 }
 0x793   : > { %v1955_v53 = vadd.f32 %v1946_v35, %v3623_v30 }
 0x795   : > { %v1961_v36 = vsel %vm789_vm1, %v1955_v53, 0.0 }
 0x796   : > { %1962 = vadd.xlane.f32.xlu2 %v1961_v36 }
 0x798   : > { %v1947_v12 = vpop.f32.mrf.mxu0 }
 0x799   : > { %v1948_v62 = vadd.f32 %v2542_v11, %v1947_v12 }
 0x79b   : > { %v1956_v16 = vadd.f32 %v1948_v62, %v3625_v29 }
 0x79d   : > { %v1964_v56 = vsel %vm789_vm1, %v1956_v16, 0.0 }
 0x79e   : > { %1965 = vadd.xlane.f32.xlu1 %v1964_v56 }
 0x7c1   : > { %v1950_v39 = vpop.f32.mrf.mxu0 }
 0x7c2   : > { %v1951_v42 = vadd.f32 %v2542_v11, %v1950_v39 }
 0x7c4   : > { %v1957_v17 = vadd.f32 %v1951_v42, %v3634_v14 }
 0x7c6   : > { %v1967_v34 = vsel %vm789_vm1, %v1957_v17, 0.0 }
 0x7c7   : > { %1968 = vadd.xlane.f32.xlu0 %v1967_v34 }
 0x7c9   : > { %v1952_v18 = vpop.f32.mrf.mxu0 }
 0x7ca   : > { %v1953_v2 = vadd.f32 %v2542_v11, %v1952_v18 }
 0x7cc   : > { %v1958_v30 = vadd.f32 %v1953_v2, %v3636_v15 }
 0x7ce   : > { %v1970_v44 = vsel %vm789_vm1, %v1958_v30, 0.0 }
 0x7cf   : > { %1971 = vadd.xlane.f32.xlu2 %v1970_v44 }
 0x809   : > { %v1963_v9 = vpop.xlane.xlu2 %1962 }
 0x80a   : > { %v1973_v29 = vmul.f32 %v1963_v9, %v3592_v47 }
 0x80c   : > { %v1977_v61 = vsub.f32 %v1955_v53, %v1973_v29 }
 0x80e   : > { %v1981_v19 = vmul.f32 %v1977_v61, %v1977_v61 }
 0x810   : > { %v1985_v20 = vsel %vm789_vm1, %v1981_v19, 0.0 }
 0x811   : > { %1986 = vadd.xlane.f32.xlu1 %v1985_v20  ;;  %v1966_v55 = vpop.xlane.xlu1 %1965 }
 0x812   : > { %v1974_v14 = vmul.f32 %v1966_v55, %v3592_v47 }
 0x814   : > { %v1978_v22 = vsub.f32 %v1956_v16, %v1974_v14 }
 0x816   : > { %v1982_v23 = vmul.f32 %v1978_v22, %v1978_v22 }
 0x818   : > { %v1988_v25 = vsel %vm789_vm1, %v1982_v23, 0.0 }
 0x819   : > { %1989 = vadd.xlane.f32.xlu0 %v1988_v25 }
 0x83a   : > { %v1969_v15 = vpop.xlane.xlu0 %1968 }
 0x83b   : > { %v1975_v38 = vmul.f32 %v1969_v15, %v3592_v47 }
 0x83d   : > { %v3670_v33 = vsub.f32 %v1957_v17, %v1975_v38 }
 0x83f   : > { %v1983_v27 = vmul.f32 %v3670_v33, %v3670_v33 }
 0x841   : > { %v1991_v13 = vsel %vm789_vm1, %v1983_v27, 0.0 }
 0x842   : > { %v1972_v43 = vpop.xlane.xlu2 %1971  ;;  %1992 = vadd.xlane.f32.xlu2 %v1991_v13 }
 0x843   : > { %v1976_v31 = vmul.f32 %v1972_v43, %v3592_v47 }
 0x845   : > { %v3676_v49 = vsub.f32 %v1958_v30, %v1976_v31 }
 0x847   : > { %v1984_v37 = vmul.f32 %v3676_v49, %v3676_v49 }
 0x849   : > { %v1994_v40 = vsel %vm789_vm1, %v1984_v37, 0.0 }
 0x84a   : > { %1995 = vadd.xlane.f32.xlu1 %v1994_v40 }
 0x884   : > { %v1987_v0 = vpop.xlane.xlu1 %1986 }
 0x885   : > { %v1997_v41 = vmul.f32 %v1987_v0, %v3592_v47 }
 0x887   : > { %v2001_v21 = vadd.f32 1e-05, %v1997_v41 }
 0x889   : > { %2627 = vrsqrt.f32 %v2001_v21  ;;  %vm2011_vm5 = vweird.f32 %v2001_v21 }
 0x88c   : > { %v1990_v50 = vpop.xlane.xlu0 %1989 }
 0x88d   : > { %v1998_v51 = vmul.f32 %v1990_v50, %v3592_v47 }
 0x88f   : > { %v2628_v52 = vpop.eup %2627  ;;  %v2002_v54 = vadd.f32 1e-05, %v1998_v51 }
 0x890   : > { %v2006_v59 = vmul.f32 %v2628_v52, %v2001_v21  ;;  %vm2012_vm4 = vweird.f32 %v2628_v52 }
 0x891   : > { %2629 = vrsqrt.f32 %v2002_v54  ;;  %vm2013_vm6 = vmor %vm2011_vm5, %vm2012_vm4  ;;  %vm2021_vm8 = vweird.f32 %v2002_v54 }
 0x892   : > { %v2007_v58 = vmul.f32 %v2628_v52, %v2006_v59 }
 0x894   : > { %v2008_v6 = vmul.f32 0.5, %v2007_v58 }
 0x896   : > { %v2009_v45 = vsub.f32 1.5, %v2008_v6 }
 0x897   : > { %v2630_v60 = vpop.eup %2629 }
 0x898   : > { %v2010_v4 = vmul.f32 %v2628_v52, %v2009_v45  ;;  %v2016_v63 = vmul.f32 %v2630_v60, %v2002_v54  ;;  %vm2022_vm7 = vweird.f32 %v2630_v60 }
 0x899   : > { %vm2023_vm9 = vmor %vm2021_vm8, %vm2022_vm7 }
 0x89a   : > { %v2014_v1 = vsel %vm2013_vm6, %v2628_v52, %v2010_v4  ;;  %v2017_v3 = vmul.f32 %v2630_v60, %v2016_v63 }
 0x89b   : > { %v2045_v24 = vmul.f32 %v2014_v1, %v1977_v61 }
 0x89c   : > { %v2018_v28 = vmul.f32 0.5, %v2017_v3 }
 0x89d   : > { %v2052_v32 = vmul.f32 %v2543_v46, %v2045_v24 }
 0x89e   : > { %v2019_v8 = vsub.f32 1.5, %v2018_v28 }
 0x89f   : > { %v2059_v26 = vadd.f32 %v2544_v5, %v2052_v32 }
 0x8a0   : > { %v2020_v48 = vmul.f32 %v2630_v60, %v2019_v8 }
 0x8a1   : > { %2063 = vst.msk [vmem:[#allocation13] sm:$0xff] %vm789_vm1, %v2059_v26 }
 0x8a2   : > { %v2024_v7 = vsel %vm2023_vm9, %v2630_v60, %v2020_v48 }
 0x8a3   : > { %v2046_v10 = vmul.f32 %v2024_v7, %v1978_v22 }
 0x8a5   : > { %v2053_v11 = vmul.f32 %v2543_v46, %v2046_v10 }
 0x8a7   : > { %v2060_v57 = vadd.f32 %v2544_v5, %v2053_v11 }
 0x8a9   : > { %2064 = vst.msk [vmem:[#allocation13 + $0x8] sm:$0xff] %vm789_vm1, %v2060_v57 }
 0x8b5   : > { %v1993_v35 = vpop.xlane.xlu2 %1992 }
 0x8b6   : > { %v1999_v53 = vmul.f32 %v1993_v35, %v3592_v47 }
 0x8b8   : > { %v2003_v36 = vadd.f32 1e-05, %v1999_v53 }
 0x8ba   : > { %2631 = vrsqrt.f32 %v2003_v36  ;;  %vm2031_vm11 = vweird.f32 %v2003_v36 }
 0x8bd   : > { %v1996_v12 = vpop.xlane.xlu1 %1995 }
 0x8be   : > { %v2000_v62 = vmul.f32 %v1996_v12, %v3592_v47 }
 0x8c0   : > { %v2632_v16 = vpop.eup %2631  ;;  %v2004_v56 = vadd.f32 1e-05, %v2000_v62 }
 0x8c1   : > { %v2026_v39 = vmul.f32 %v2632_v16, %v2003_v36  ;;  %vm2032_vm10 = vweird.f32 %v2632_v16 }
 0x8c2   : > { %2633 = vrsqrt.f32 %v2004_v56  ;;  %vm2033_vm12 = vmor %vm2031_vm11, %vm2032_vm10  ;;  %vm2041_vm14 = vweird.f32 %v2004_v56 }
 0x8c3   : > { %v2027_v42 = vmul.f32 %v2632_v16, %v2026_v39 }
 0x8c5   : > { %v2028_v17 = vmul.f32 0.5, %v2027_v42 }
 0x8c7   : > { %v2029_v34 = vsub.f32 1.5, %v2028_v17 }
 0x8c8   : > { %v2634_v18 = vpop.eup %2633 }
 0x8c9   : > { %v2030_v2 = vmul.f32 %v2632_v16, %v2029_v34  ;;  %v2036_v30 = vmul.f32 %v2634_v18, %v2004_v56  ;;  %vm2042_vm13 = vweird.f32 %v2634_v18 }
 0x8ca   : > { %vm2043_vm15 = vmor %vm2041_vm14, %vm2042_vm13 }
 0x8cb   : > { %v2034_v44 = vsel %vm2033_vm12, %v2632_v16, %v2030_v2  ;;  %v2037_v9 = vmul.f32 %v2634_v18, %v2036_v30 }
 0x8cc   : > { %v2047_v29 = vmul.f32 %v2034_v44, %v3670_v33 }
 0x8cd   : > { %v2038_v61 = vmul.f32 0.5, %v2037_v9 }
 0x8ce   : > { %v2054_v47 = vmul.f32 %v2543_v46, %v2047_v29 }
 0x8cf   : > { %v2039_v19 = vsub.f32 1.5, %v2038_v61 }
 0x8d0   : > { %v2061_v20 = vadd.f32 %v2544_v5, %v2054_v47 }
 0x8d1   : > { %v2040_v55 = vmul.f32 %v2634_v18, %v2039_v19 }
 0x8d2   : > { %2065 = vst.msk [vmem:[#allocation13 + $0x10] sm:$0xff] %vm789_vm1, %v2061_v20 }
 0x8d3   : > { %v2044_v14 = vsel %vm2043_vm15, %v2634_v18, %v2040_v55 }
 0x8d4   : > { %v2048_v22 = vmul.f32 %v2044_v14, %v3676_v49 }
 0x8d6   : > { %v2055_v23 = vmul.f32 %v2543_v46, %v2048_v22 }
 0x8d8   : > { %v2062_v25 = vadd.f32 %v2544_v5, %v2055_v23 }
 0x8da   : > { %2066 = vst.msk [vmem:[#allocation13 + $0x18] sm:$0xff] %vm789_vm1, %v2062_v25 }
 0x8db   : > { %2437 = dma.vmem_to_hbm [thread:$0]  (%p2460_p10), %s2073_s7, 512, %s2075_s3, [#allocation4], %s2911_s21, %s2911_s21, %s2907_s15  }
 0x8dc   : > { %2880 = dma.done.wait (%p2460_p10), [#allocation4], 512  }
 0x8dd   : > { %2882 = vsyncadd (%p2460_p10), [#allocation4], 4294966784 }
 0x8de PF: > { %s3780_s16 = sld [smem:[#allocation20_spill]]  ;;  %s3783_s29 = smov %s2889_s30 }
 0x8df   : > { %s3781_s9 = sld [smem:[#allocation19_spill]] }
 0x8e0   : > { %s3782_s15 = sld [smem:[#allocation21_spill]] }
 0x8e4   : > { %p34_p5 = scmp.ge.s32.totalorder %s3780_s16, 4  }
 0x8e5   : > { %s3784_s30 = smov %s3781_s9 }
 0x8e6   :  { %36 = sbr.rel (!%p34_p5) target bundleno = 22 (0x16), region = 196 }
 0x8eb   :  { %2091 = vsyncpa [#allocation3], 1 }
 0x8ec   :  { %2093 = vsyncpa [#allocation3 + $0x1], 1 }
 0x8ed   :  { %2094 = vsyncpa [#allocation6], 1 }
 0x8ee   :  { %2096 = vsyncpa [#allocation6 + $0x1], 1 }
 0x8ef   :  { %2097 = vsyncpa [#allocation9], 1 }
 0x8f0   :  { %2099 = vsyncpa [#allocation9 + $0x1], 1 }
 0x8f1   :  { %2100 = vsyncpa [#allocation12], 1 }
 0x8f2   :  { %2102 = vsyncpa [#allocation12 + $0x1], 1 }
 0x8f3   :  { %2103 = vsyncpa [#allocation4], 1 }
 0x8f4   :  { %2105 = vsyncpa [#allocation4 + $0x1], 1 }

</bundles_post_ra>
